<compile_context>
chip_gen: v5e
topology: v5e:2x2
jax: 0.10.0
libtpu: 0.0.40
codegen_flags: <defaults>
</compile_context>

<pallas_src>
import math
from functools import partial

import jax
import jax.numpy as jnp
from jax.experimental import pallas as pl
from jax.experimental.pallas import tpu as pltpu


def _round_up(x, m):
    return (x + m - 1) // m * m


def _pick_time_block(seq_pad, max_block=32):
    """Largest multiple of 8 that divides seq_pad and is <= max_block."""
    best = 8
    for cand in range(8, min(seq_pad, max_block) + 1, 8):
        if seq_pad % cand == 0:
            best = cand
    return best


def _lstm_kernel(gx_ref, wh_ref, h0_ref, c0_ref,
                 hseq_ref, hout_ref, cout_ref,
                 *, t_blk, seq_len, needs_mask):
    """One grid step = t_blk timesteps of the recurrence for one batch block.

    gx_ref   : [t_blk, b_blk, 4*Hp]  precomputed x@Wx + b (gate order i, f, o, g)
    wh_ref   : [Hp, 4*Hp]            fused hidden weights (already matmul dtype)
    h0 / c0  : [b_blk, Hp]           initial state
    hseq_ref : [b_blk, t_blk, Hp]    batch-major per-timestep hidden output
    hout/cout: [b_blk, Hp]           resident carry == final (h_n, c_n)
    """
    ti = pl.program_id(1)
    hp = wh_ref.shape[0]

    @pl.when(ti == 0)
    def _():
        hout_ref[...] = h0_ref[...]
        cout_ref[...] = c0_ref[...]

    wh = wh_ref[...]                       # pre-cast in wrapper: no per-step cast
    h = hout_ref[...]
    c = cout_ref[...]

    # Static unroll over the time block: static sublane-store indices, bounded
    # trace size (t_blk <= 32).
    for tt in range(t_blk):
        pre = (jnp.dot(h.astype(wh.dtype), wh,
                       preferred_element_type=jnp.float32)
               + gx_ref[tt].astype(jnp.float32))            # [b_blk, 4*Hp] f32
        sig = jax.nn.sigmoid(pre[:, :3 * hp])               # i | f | o (one wide call)
        i_g = sig[:, 0 * hp:1 * hp]
        f_g = sig[:, 1 * hp:2 * hp]
        o_g = sig[:, 2 * hp:3 * hp]
        g_g = jnp.tanh(pre[:, 3 * hp:])
        c_new = f_g * c + i_g * g_g
        h_new = o_g * jnp.tanh(c_new)
        hseq_ref[:, tt:tt + 1, :] = h_new[:, None, :]       # batch-major store (VMEM)
        if needs_mask:
            valid = (ti * t_blk + tt) < seq_len             # guard padded timesteps
            h = jnp.where(valid, h_new, h)
            c = jnp.where(valid, c_new, c)
        else:
            h, c = h_new, c_new

    hout_ref[...] = h
    cout_ref[...] = c


def _pack_params(p, hidden, hidden_pad, matmul_dtype):
    """Fuse per-gate weights into (i, f, o, g)-ordered, lane-padded blocks."""
    pad_h = hidden_pad - hidden
    wx_parts, wh_parts, b_parts = [], [], []
    for g in ("i", "f", "o", "g"):
        wx_g = jnp.pad(p[f"w_i{g}"].T.astype(jnp.float32), ((0, 0), (0, pad_h)))
        wh_g = jnp.pad(p[f"w_h{g}"].T.astype(jnp.float32), ((0, pad_h), (0, pad_h)))
        b_g = jnp.pad((p[f"b_i{g}"] + p[f"b_h{g}"]).T.astype(jnp.float32),
                      ((0, 0), (0, pad_h)))
        wx_parts.append(wx_g)
        wh_parts.append(wh_g)
        b_parts.append(b_g)
    wx = jnp.concatenate(wx_parts, axis=1)                        # [I, 4*Hp] f32
    wh = jnp.concatenate(wh_parts, axis=1).astype(matmul_dtype)   # [Hp, 4*Hp]
    b = jnp.concatenate(b_parts, axis=1)                          # [1, 4*Hp] f32
    return wx, wh, b


def naive_lstm_pallas(inputs, state, params, *, matmul_dtype=jnp.float32,
                      max_time_block=32):
    """Forward pass matching NaiveLSTM.forward (batch-first convention).

    inputs : [B, S, I] float32
    state  : None or (h0, c0) each [B, 1, H]
    params : dict with the 16 NaiveLSTM parameters (PyTorch shapes)
    matmul_dtype: jnp.float32 (exact) or jnp.bfloat16 (bf16 MXU feed + bf16 gx
                  stream; f32 accumulation and f32 elementwise gate math kept).
    Returns hidden_seq [B, S, H] and (h_n, c_n) each [B, 1, H].
    """
    B, S, I = inputs.shape
    H = params["w_hi"].shape[0]
    Hp = _round_up(H, 128)          # lane-dense gates / states / stores
    Bp = _round_up(B, 8)            # full f32 sublanes
    if Bp > 128:                    # batch blocks for v7x 2-TC sharding at large B
        Bp = _round_up(Bp, 128)
        b_blk = 128
    else:
        b_blk = Bp
    Sp = _round_up(S, 8)            # time padded so t_blk can be a sublane multiple
    t_blk = _pick_time_block(Sp, max_time_block)
    stream_dtype = jnp.bfloat16 if jnp.dtype(matmul_dtype).itemsize < 4 else jnp.float32

    wx, wh, b = _pack_params(params, H, Hp, matmul_dtype)

    x = jnp.pad(inputs.astype(jnp.float32), ((0, Bp - B), (0, 0), (0, 0)))

    # Hoisted input projection: one big [S*Bp, I] x [I, 4*Hp] matmul outside the
    # serial loop, produced time-major so the kernel grabs contiguous timestep
    # blocks. Bias is folded here and NOT re-added inside the kernel.
    gx = jnp.einsum("bti,ig->tbg", x, wx) + b               # [S, Bp, 4*Hp] f32
    gx = jnp.pad(gx, ((0, Sp - S), (0, 0), (0, 0))).astype(stream_dtype)

    if state is None:
        h0 = jnp.zeros((Bp, Hp), jnp.float32)
        c0 = jnp.zeros((Bp, Hp), jnp.float32)
    else:
        h0 = jnp.pad(state[0].reshape(B, H).astype(jnp.float32),
                     ((0, Bp - B), (0, Hp - H)))
        c0 = jnp.pad(state[1].reshape(B, H).astype(jnp.float32),
                     ((0, Bp - B), (0, Hp - H)))

    kernel = partial(_lstm_kernel, t_blk=t_blk, seq_len=S, needs_mask=(Sp != S))

    # Scoped-VMEM budget: 2x (double-buffered) gx + hseq blocks, resident Wh,
    # carries + init blocks; capped at 64 MiB (safe on v7x as well as v5e/v6e).
    f32b = 4
    gx_blk_b = t_blk * b_blk * 4 * Hp * jnp.dtype(stream_dtype).itemsize
    hs_blk_b = b_blk * t_blk * Hp * f32b
    wh_b = Hp * 4 * Hp * jnp.dtype(matmul_dtype).itemsize
    st_b = 4 * b_blk * Hp * f32b
    vmem_limit = int(min(64 * 1024 * 1024,
                         max(16 * 1024 * 1024,
                             2 * (gx_blk_b + hs_blk_b + wh_b + st_b) + (2 << 20))))

    hseq, h_n, c_n = pl.pallas_call(
        kernel,
        out_shape=(
            jax.ShapeDtypeStruct((Bp, Sp, Hp), jnp.float32),
            jax.ShapeDtypeStruct((Bp, Hp), jnp.float32),
            jax.ShapeDtypeStruct((Bp, Hp), jnp.float32),
        ),
        grid_spec=pltpu.PrefetchScalarGridSpec(
            num_scalar_prefetch=0,
            grid=(Bp // b_blk, Sp // t_blk),
            in_specs=[
                pl.BlockSpec((t_blk, b_blk, 4 * Hp), lambda bi, ti: (ti, bi, 0)),  # gx
                pl.BlockSpec((Hp, 4 * Hp), lambda bi, ti: (0, 0)),                 # Wh (resident)
                pl.BlockSpec((b_blk, Hp), lambda bi, ti: (bi, 0)),                 # h0
                pl.BlockSpec((b_blk, Hp), lambda bi, ti: (bi, 0)),                 # c0
            ],
            out_specs=[
                pl.BlockSpec((b_blk, t_blk, Hp), lambda bi, ti: (bi, ti, 0)),      # hidden_seq
                pl.BlockSpec((b_blk, Hp), lambda bi, ti: (bi, 0)),                 # h_n (carry)
                pl.BlockSpec((b_blk, Hp), lambda bi, ti: (bi, 0)),                 # c_n (carry)
            ],
        ),
        compiler_params=pltpu.CompilerParams(
            dimension_semantics=("parallel", "arbitrary"),   # batch parallel, time serial
            vmem_limit_bytes=vmem_limit,
        ),
    )(gx, wh, h0, c0)

    hidden_seq = hseq[:B, :S, :H]                            # batch-major; no transpose
    return hidden_seq, (h_n[:B, :H][:, None, :], c_n[:B, :H][:, None, :])


def init_naive_lstm_params(key, input_size, hidden_size):
    """Deterministic re-implementation of NaiveLSTM.reset_weight (uniform +-1/sqrt(H))."""
    stdv = 1.0 / math.sqrt(hidden_size)
    names = ["w_ii", "w_hi", "b_ii", "b_hi",
             "w_if", "w_hf", "b_if", "b_hf",
             "w_io", "w_ho", "b_io", "b_ho",
             "w_ig", "w_hg", "b_ig", "b_hg"]
    shapes = {
        "w_ii": (hidden_size, input_size), "w_hi": (hidden_size, hidden_size),
        "b_ii": (hidden_size, 1), "b_hi": (hidden_size, 1),
        "w_if": (hidden_size, input_size), "w_hf": (hidden_size, hidden_size),
        "b_if": (hidden_size, 1), "b_hf": (hidden_size, 1),
        "w_io": (hidden_size, input_size), "w_ho": (hidden_size, hidden_size),
        "b_io": (hidden_size, 1), "b_ho": (hidden_size, 1),
        "w_ig": (hidden_size, input_size), "w_hg": (hidden_size, hidden_size),
        "b_ig": (hidden_size, 1), "b_hg": (hidden_size, 1),
    }
    keys = jax.random.split(key, len(names))
    return {n: jax.random.uniform(k, shapes[n], jnp.float32, -stdv, stdv)
            for n, k in zip(names, keys)}


def naive_lstm_reference(inputs, state, p):
    """Pure-JAX transcription of the PyTorch forward (batch-major equivalent)."""
    B, S, I = inputs.shape
    H = p["w_hi"].shape[0]
    if state is None:
        h_t = jnp.zeros((H, B), jnp.float32)
        c_t = jnp.zeros((H, B), jnp.float32)
    else:
        h_t = state[0].reshape(B, H).T
        c_t = state[1].reshape(B, H).T
    outs = []
    for t in range(S):
        x = inputs[:, t, :].T                                   # [I, B]
        i = jax.nn.sigmoid(p["w_ii"] @ x + p["b_ii"] + p["w_hi"] @ h_t + p["b_hi"])
        f = jax.nn.sigmoid(p["w_if"] @ x + p["b_if"] + p["w_hf"] @ h_t + p["b_hf"])
        g = jnp.tanh(p["w_ig"] @ x + p["b_ig"] + p["w_hg"] @ h_t + p["b_hg"])
        o = jax.nn.sigmoid(p["w_io"] @ x + p["b_io"] + p["w_ho"] @ h_t + p["b_ho"])
        c_t = f * c_t + i * g
        h_t = o * jnp.tanh(c_t)
        outs.append(h_t.T)                                      # [B, H]
    hidden_seq = jnp.stack(outs, axis=1)                        # [B, S, H]
    return hidden_seq, (h_t.T[:, None, :], c_t.T[:, None, :])


if __name__ == "__main__":
    B, S, I, H = 2, 8, 16, 32
    key = jax.random.PRNGKey(0)
    k_param, k_x, k_h, k_c = jax.random.split(key, 4)

    p = init_naive_lstm_params(k_param, I, H)
    x = jax.random.normal(k_x, (B, S, I), jnp.float32)
    h0 = jax.random.normal(k_h, (B, 1, H), jnp.float32)
    c0 = jax.random.normal(k_c, (B, 1, H), jnp.float32)

    # Exact f32 path.
    hseq, (h_n, c_n) = naive_lstm_pallas(x, (h0, c0), p)
    jax.block_until_ready((hseq, h_n, c_n))

    hseq_ref, (h_ref, c_ref) = naive_lstm_reference(x, (h0, c0), p)
    assert jnp.allclose(hseq, hseq_ref, atol=1e-5, rtol=1e-5)
    assert jnp.allclose(h_n, h_ref, atol=1e-5, rtol=1e-5)
    assert jnp.allclose(c_n, c_ref, atol=1e-5, rtol=1e-5)

    # state=None path.
    hseq2, _ = naive_lstm_pallas(x, None, p)
    hseq2_ref, _ = naive_lstm_reference(x, None, p)
    assert jnp.allclose(hseq2, hseq2_ref, atol=1e-5, rtol=1e-5)

    # Sequence length not a multiple of 8 (exercises the padded-time mask path).
    x5 = x[:, :5, :]
    hseq5, (h5, c5) = naive_lstm_pallas(x5, (h0, c0), p)
    hseq5_ref, (h5_ref, c5_ref) = naive_lstm_reference(x5, (h0, c0), p)
    assert jnp.allclose(hseq5, hseq5_ref, atol=1e-5, rtol=1e-5)
    assert jnp.allclose(h5, h5_ref, atol=1e-5, rtol=1e-5)
    assert jnp.allclose(c5, c5_ref, atol=1e-5, rtol=1e-5)

    # bf16 MXU feed + bf16 gx stream (looser, sequence-length-dependent tolerance).
    hseq_bf, (h_bf, c_bf) = naive_lstm_pallas(x, (h0, c0), p,
                                              matmul_dtype=jnp.bfloat16)
    jax.block_until_ready((hseq_bf, h_bf, c_bf))
    assert jnp.allclose(hseq_bf, hseq_ref, atol=5e-2, rtol=5e-2)
    assert jnp.allclose(h_bf, h_ref, atol=5e-2, rtol=5e-2)
    assert jnp.allclose(c_bf, c_ref, atol=1e-1, rtol=1e-1)

    print("KERNEL_OK")
</pallas_src>

<mosaic_0001>
module attributes {stable_mosaic.version = 11 : i64} {
  func.func @_lstm_kernel(%arg0: i32, %arg1: i32, %arg2: memref<8x8x512xf32, #tpu.memory_space<vmem>>, %arg3: memref<128x512xf32, #tpu.memory_space<vmem>>, %arg4: memref<8x128xf32, #tpu.memory_space<vmem>>, %arg5: memref<8x128xf32, #tpu.memory_space<vmem>>, %arg6: memref<8x8x128xf32, #tpu.memory_space<vmem>>, %arg7: memref<8x128xf32, #tpu.memory_space<vmem>>, %arg8: memref<8x128xf32, #tpu.memory_space<vmem>>) attributes {dimension_semantics = [#tpu.dimension_semantics<parallel>, #tpu.dimension_semantics<arbitrary>], iteration_bounds = array<i64: 1, 1>, scalar_prefetch = 0 : i64, scratch_operands = 0 : i64, tpu.core_type = #tpu.core_type<tc>, window_params = [{transform_indices = @transform_0, window_bounds = array<i64: 8, 8, 512>}, {pipeline_mode = #tpu.pipeline_mode<synchronous>, transform_indices = @transform_1, window_bounds = array<i64: 128, 512>}, {transform_indices = @transform_2, window_bounds = array<i64: 8, 128>}, {transform_indices = @transform_3, window_bounds = array<i64: 8, 128>}, {transform_indices = @transform_4, window_bounds = array<i64: 8, 8, 128>}, {transform_indices = @transform_5, window_bounds = array<i64: 8, 128>}, {transform_indices = @transform_6, window_bounds = array<i64: 8, 128>}]} {
    %c0_i32 = arith.constant 0 : i32
    %0 = arith.cmpi eq, %arg1, %c0_i32 : i32
    %1 = arith.extui %0 : i1 to i32
    %c0_i32_0 = arith.constant 0 : i32
    %2 = arith.cmpi ne, %1, %c0_i32_0 : i32
    scf.if %2 {
      %c0_66 = arith.constant 0 : index
      %c0_67 = arith.constant 0 : index
      %184 = vector.load %arg4[%c0_66, %c0_67] : memref<8x128xf32, #tpu.memory_space<vmem>>, vector<8x128xf32>
      %c0_68 = arith.constant 0 : index
      %c0_69 = arith.constant 0 : index
      %185 = vector.load %arg7[%c0_68, %c0_69] : memref<8x128xf32, #tpu.memory_space<vmem>>, vector<8x128xf32>
      tpu.vector_store %arg7[%c0_68, %c0_69], %184 {strides = array<i32>} : memref<8x128xf32, #tpu.memory_space<vmem>>, vector<8x128xf32>,
      %c0_70 = arith.constant 0 : index
      %c0_71 = arith.constant 0 : index
      %186 = vector.load %arg5[%c0_70, %c0_71] : memref<8x128xf32, #tpu.memory_space<vmem>>, vector<8x128xf32>
      %c0_72 = arith.constant 0 : index
      %c0_73 = arith.constant 0 : index
      %187 = vector.load %arg8[%c0_72, %c0_73] : memref<8x128xf32, #tpu.memory_space<vmem>>, vector<8x128xf32>
      tpu.vector_store %arg8[%c0_72, %c0_73], %186 {strides = array<i32>} : memref<8x128xf32, #tpu.memory_space<vmem>>, vector<8x128xf32>,
    } else {
    }
    %c0 = arith.constant 0 : index
    %c0_1 = arith.constant 0 : index
    %3 = vector.load %arg3[%c0, %c0_1] : memref<128x512xf32, #tpu.memory_space<vmem>>, vector<128x512xf32>
    %c0_2 = arith.constant 0 : index
    %c0_3 = arith.constant 0 : index
    %4 = vector.load %arg7[%c0_2, %c0_3] : memref<8x128xf32, #tpu.memory_space<vmem>>, vector<8x128xf32>
    %c0_4 = arith.constant 0 : index
    %c0_5 = arith.constant 0 : index
    %5 = vector.load %arg8[%c0_4, %c0_5] : memref<8x128xf32, #tpu.memory_space<vmem>>, vector<8x128xf32>
    %cst = arith.constant dense<0.000000e+00> : vector<8x512xf32>
    %6 = tpu.matmul %4, %3, %cst {dimension_numbers = #tpu.dot_dimension_numbers<[1], [0], [0], [1], [0, 0, 1, 1], [], []>} : vector<8x128xf32>, vector<128x512xf32>, vector<8x512xf32> -> vector<8x512xf32>
    %c0_6 = arith.constant 0 : index
    %c0_7 = arith.constant 0 : index
    %c0_8 = arith.constant 0 : index
    %7 = vector.load %arg2[%c0_6, %c0_7, %c0_8] : memref<8x8x512xf32, #tpu.memory_space<vmem>>, vector<1x8x512xf32>
    %8 = vector.shape_cast %7 : vector<1x8x512xf32> to vector<8x512xf32>
    %9 = arith.addf %6, %8 : vector<8x512xf32>
    %10 = vector.extract_strided_slice %9 {offsets = [0, 0], sizes = [8, 384], strides = [1, 1]} : vector<8x512xf32> to vector<8x384xf32>
    %11 = arith.negf %10 : vector<8x384xf32>
    %12 = math.exp %11 : vector<8x384xf32>
    %cst_9 = arith.constant 1.000000e+00 : f32
    %13 = vector.broadcast %cst_9 : f32 to vector<8x384xf32>
    %14 = arith.addf %13, %12 : vector<8x384xf32>
    %15 = arith.divf %13, %14 : vector<8x384xf32>
    %16 = vector.extract_strided_slice %15 {offsets = [0, 0], sizes = [8, 128], strides = [1, 1]} : vector<8x384xf32> to vector<8x128xf32>
    %17 = vector.extract_strided_slice %15 {offsets = [0, 128], sizes = [8, 128], strides = [1, 1]} : vector<8x384xf32> to vector<8x128xf32>
    %18 = vector.extract_strided_slice %15 {offsets = [0, 256], sizes = [8, 128], strides = [1, 1]} : vector<8x384xf32> to vector<8x128xf32>
    %19 = vector.extract_strided_slice %9 {offsets = [0, 384], sizes = [8, 128], strides = [1, 1]} : vector<8x512xf32> to vector<8x128xf32>
    %20 = math.tanh %19 : vector<8x128xf32>
    %21 = arith.mulf %17, %5 : vector<8x128xf32>
    %22 = arith.mulf %16, %20 : vector<8x128xf32>
    %23 = arith.addf %21, %22 : vector<8x128xf32>
    %24 = math.tanh %23 : vector<8x128xf32>
    %25 = arith.mulf %18, %24 : vector<8x128xf32>
    %26 = vector.shape_cast %25 : vector<8x128xf32> to vector<8x1x128xf32>
    %c0_10 = arith.constant 0 : index
    %c0_11 = arith.constant 0 : index
    %c0_12 = arith.constant 0 : index
    %27 = vector.load %arg6[%c0_10, %c0_11, %c0_12] : memref<8x8x128xf32, #tpu.memory_space<vmem>>, vector<8x1x128xf32>
    tpu.vector_store %arg6[%c0_10, %c0_11, %c0_12], %26 {strides = array<i32>} : memref<8x8x128xf32, #tpu.memory_space<vmem>>, vector<8x1x128xf32>,
    %cst_13 = arith.constant dense<0.000000e+00> : vector<8x512xf32>
    %28 = tpu.matmul %25, %3, %cst_13 {dimension_numbers = #tpu.dot_dimension_numbers<[1], [0], [0], [1], [0, 0, 1, 1], [], []>} : vector<8x128xf32>, vector<128x512xf32>, vector<8x512xf32> -> vector<8x512xf32>
    %c1 = arith.constant 1 : index
    %c0_14 = arith.constant 0 : index
    %c0_15 = arith.constant 0 : index
    %29 = vector.load %arg2[%c1, %c0_14, %c0_15] : memref<8x8x512xf32, #tpu.memory_space<vmem>>, vector<1x8x512xf32>
    %30 = vector.shape_cast %29 : vector<1x8x512xf32> to vector<8x512xf32>
    %31 = arith.addf %28, %30 : vector<8x512xf32>
    %32 = vector.extract_strided_slice %31 {offsets = [0, 0], sizes = [8, 384], strides = [1, 1]} : vector<8x512xf32> to vector<8x384xf32>
    %33 = arith.negf %32 : vector<8x384xf32>
    %34 = math.exp %33 : vector<8x384xf32>
    %cst_16 = arith.constant 1.000000e+00 : f32
    %35 = vector.broadcast %cst_16 : f32 to vector<8x384xf32>
    %36 = arith.addf %35, %34 : vector<8x384xf32>
    %37 = arith.divf %35, %36 : vector<8x384xf32>
    %38 = vector.extract_strided_slice %37 {offsets = [0, 0], sizes = [8, 128], strides = [1, 1]} : vector<8x384xf32> to vector<8x128xf32>
    %39 = vector.extract_strided_slice %37 {offsets = [0, 128], sizes = [8, 128], strides = [1, 1]} : vector<8x384xf32> to vector<8x128xf32>
    %40 = vector.extract_strided_slice %37 {offsets = [0, 256], sizes = [8, 128], strides = [1, 1]} : vector<8x384xf32> to vector<8x128xf32>
    %41 = vector.extract_strided_slice %31 {offsets = [0, 384], sizes = [8, 128], strides = [1, 1]} : vector<8x512xf32> to vector<8x128xf32>
    %42 = math.tanh %41 : vector<8x128xf32>
    %43 = arith.mulf %39, %23 : vector<8x128xf32>
    %44 = arith.mulf %38, %42 : vector<8x128xf32>
    %45 = arith.addf %43, %44 : vector<8x128xf32>
    %46 = math.tanh %45 : vector<8x128xf32>
    %47 = arith.mulf %40, %46 : vector<8x128xf32>
    %48 = vector.shape_cast %47 : vector<8x128xf32> to vector<8x1x128xf32>
    %c0_17 = arith.constant 0 : index
    %c1_18 = arith.constant 1 : index
    %c0_19 = arith.constant 0 : index
    %49 = vector.load %arg6[%c0_17, %c1_18, %c0_19] : memref<8x8x128xf32, #tpu.memory_space<vmem>>, vector<8x1x128xf32>
    tpu.vector_store %arg6[%c0_17, %c1_18, %c0_19], %48 {strides = array<i32>} : memref<8x8x128xf32, #tpu.memory_space<vmem>>, vector<8x1x128xf32>,
    %cst_20 = arith.constant dense<0.000000e+00> : vector<8x512xf32>
    %50 = tpu.matmul %47, %3, %cst_20 {dimension_numbers = #tpu.dot_dimension_numbers<[1], [0], [0], [1], [0, 0, 1, 1], [], []>} : vector<8x128xf32>, vector<128x512xf32>, vector<8x512xf32> -> vector<8x512xf32>
    %c2 = arith.constant 2 : index
    %c0_21 = arith.constant 0 : index
    %c0_22 = arith.constant 0 : index
    %51 = vector.load %arg2[%c2, %c0_21, %c0_22] : memref<8x8x512xf32, #tpu.memory_space<vmem>>, vector<1x8x512xf32>
    %52 = vector.shape_cast %51 : vector<1x8x512xf32> to vector<8x512xf32>
    %53 = arith.addf %50, %52 : vector<8x512xf32>
    %54 = vector.extract_strided_slice %53 {offsets = [0, 0], sizes = [8, 384], strides = [1, 1]} : vector<8x512xf32> to vector<8x384xf32>
    %55 = arith.negf %54 : vector<8x384xf32>
    %56 = math.exp %55 : vector<8x384xf32>
    %cst_23 = arith.constant 1.000000e+00 : f32
    %57 = vector.broadcast %cst_23 : f32 to vector<8x384xf32>
    %58 = arith.addf %57, %56 : vector<8x384xf32>
    %59 = arith.divf %57, %58 : vector<8x384xf32>
    %60 = vector.extract_strided_slice %59 {offsets = [0, 0], sizes = [8, 128], strides = [1, 1]} : vector<8x384xf32> to vector<8x128xf32>
    %61 = vector.extract_strided_slice %59 {offsets = [0, 128], sizes = [8, 128], strides = [1, 1]} : vector<8x384xf32> to vector<8x128xf32>
    %62 = vector.extract_strided_slice %59 {offsets = [0, 256], sizes = [8, 128], strides = [1, 1]} : vector<8x384xf32> to vector<8x128xf32>
    %63 = vector.extract_strided_slice %53 {offsets = [0, 384], sizes = [8, 128], strides = [1, 1]} : vector<8x512xf32> to vector<8x128xf32>
    %64 = math.tanh %63 : vector<8x128xf32>
    %65 = arith.mulf %61, %45 : vector<8x128xf32>
    %66 = arith.mulf %60, %64 : vector<8x128xf32>
    %67 = arith.addf %65, %66 : vector<8x128xf32>
    %68 = math.tanh %67 : vector<8x128xf32>
    %69 = arith.mulf %62, %68 : vector<8x128xf32>
    %70 = vector.shape_cast %69 : vector<8x128xf32> to vector<8x1x128xf32>
    %c0_24 = arith.constant 0 : index
    %c2_25 = arith.constant 2 : index
    %c0_26 = arith.constant 0 : index
    %71 = vector.load %arg6[%c0_24, %c2_25, %c0_26] : memref<8x8x128xf32, #tpu.memory_space<vmem>>, vector<8x1x128xf32>
    tpu.vector_store %arg6[%c0_24, %c2_25, %c0_26], %70 {strides = array<i32>} : memref<8x8x128xf32, #tpu.memory_space<vmem>>, vector<8x1x128xf32>,
    %cst_27 = arith.constant dense<0.000000e+00> : vector<8x512xf32>
    %72 = tpu.matmul %69, %3, %cst_27 {dimension_numbers = #tpu.dot_dimension_numbers<[1], [0], [0], [1], [0, 0, 1, 1], [], []>} : vector<8x128xf32>, vector<128x512xf32>, vector<8x512xf32> -> vector<8x512xf32>
    %c3 = arith.constant 3 : index
    %c0_28 = arith.constant 0 : index
    %c0_29 = arith.constant 0 : index
    %73 = vector.load %arg2[%c3, %c0_28, %c0_29] : memref<8x8x512xf32, #tpu.memory_space<vmem>>, vector<1x8x512xf32>
    %74 = vector.shape_cast %73 : vector<1x8x512xf32> to vector<8x512xf32>
    %75 = arith.addf %72, %74 : vector<8x512xf32>
    %76 = vector.extract_strided_slice %75 {offsets = [0, 0], sizes = [8, 384], strides = [1, 1]} : vector<8x512xf32> to vector<8x384xf32>
    %77 = arith.negf %76 : vector<8x384xf32>
    %78 = math.exp %77 : vector<8x384xf32>
    %cst_30 = arith.constant 1.000000e+00 : f32
    %79 = vector.broadcast %cst_30 : f32 to vector<8x384xf32>
    %80 = arith.addf %79, %78 : vector<8x384xf32>
    %81 = arith.divf %79, %80 : vector<8x384xf32>
    %82 = vector.extract_strided_slice %81 {offsets = [0, 0], sizes = [8, 128], strides = [1, 1]} : vector<8x384xf32> to vector<8x128xf32>
    %83 = vector.extract_strided_slice %81 {offsets = [0, 128], sizes = [8, 128], strides = [1, 1]} : vector<8x384xf32> to vector<8x128xf32>
    %84 = vector.extract_strided_slice %81 {offsets = [0, 256], sizes = [8, 128], strides = [1, 1]} : vector<8x384xf32> to vector<8x128xf32>
    %85 = vector.extract_strided_slice %75 {offsets = [0, 384], sizes = [8, 128], strides = [1, 1]} : vector<8x512xf32> to vector<8x128xf32>
    %86 = math.tanh %85 : vector<8x128xf32>
    %87 = arith.mulf %83, %67 : vector<8x128xf32>
    %88 = arith.mulf %82, %86 : vector<8x128xf32>
    %89 = arith.addf %87, %88 : vector<8x128xf32>
    %90 = math.tanh %89 : vector<8x128xf32>
    %91 = arith.mulf %84, %90 : vector<8x128xf32>
    %92 = vector.shape_cast %91 : vector<8x128xf32> to vector<8x1x128xf32>
    %c0_31 = arith.constant 0 : index
    %c3_32 = arith.constant 3 : index
    %c0_33 = arith.constant 0 : index
    %93 = vector.load %arg6[%c0_31, %c3_32, %c0_33] : memref<8x8x128xf32, #tpu.memory_space<vmem>>, vector<8x1x128xf32>
    tpu.vector_store %arg6[%c0_31, %c3_32, %c0_33], %92 {strides = array<i32>} : memref<8x8x128xf32, #tpu.memory_space<vmem>>, vector<8x1x128xf32>,
    %cst_34 = arith.constant dense<0.000000e+00> : vector<8x512xf32>
    %94 = tpu.matmul %91, %3, %cst_34 {dimension_numbers = #tpu.dot_dimension_numbers<[1], [0], [0], [1], [0, 0, 1, 1], [], []>} : vector<8x128xf32>, vector<128x512xf32>, vector<8x512xf32> -> vector<8x512xf32>
    %c4 = arith.constant 4 : index
    %c0_35 = arith.constant 0 : index
    %c0_36 = arith.constant 0 : index
    %95 = vector.load %arg2[%c4, %c0_35, %c0_36] : memref<8x8x512xf32, #tpu.memory_space<vmem>>, vector<1x8x512xf32>
    %96 = vector.shape_cast %95 : vector<1x8x512xf32> to vector<8x512xf32>
    %97 = arith.addf %94, %96 : vector<8x512xf32>
    %98 = vector.extract_strided_slice %97 {offsets = [0, 0], sizes = [8, 384], strides = [1, 1]} : vector<8x512xf32> to vector<8x384xf32>
    %99 = arith.negf %98 : vector<8x384xf32>
    %100 = math.exp %99 : vector<8x384xf32>
    %cst_37 = arith.constant 1.000000e+00 : f32
    %101 = vector.broadcast %cst_37 : f32 to vector<8x384xf32>
    %102 = arith.addf %101, %100 : vector<8x384xf32>
    %103 = arith.divf %101, %102 : vector<8x384xf32>
    %104 = vector.extract_strided_slice %103 {offsets = [0, 0], sizes = [8, 128], strides = [1, 1]} : vector<8x384xf32> to vector<8x128xf32>
    %105 = vector.extract_strided_slice %103 {offsets = [0, 128], sizes = [8, 128], strides = [1, 1]} : vector<8x384xf32> to vector<8x128xf32>
    %106 = vector.extract_strided_slice %103 {offsets = [0, 256], sizes = [8, 128], strides = [1, 1]} : vector<8x384xf32> to vector<8x128xf32>
    %107 = vector.extract_strided_slice %97 {offsets = [0, 384], sizes = [8, 128], strides = [1, 1]} : vector<8x512xf32> to vector<8x128xf32>
    %108 = math.tanh %107 : vector<8x128xf32>
    %109 = arith.mulf %105, %89 : vector<8x128xf32>
    %110 = arith.mulf %104, %108 : vector<8x128xf32>
    %111 = arith.addf %109, %110 : vector<8x128xf32>
    %112 = math.tanh %111 : vector<8x128xf32>
    %113 = arith.mulf %106, %112 : vector<8x128xf32>
    %114 = vector.shape_cast %113 : vector<8x128xf32> to vector<8x1x128xf32>
    %c0_38 = arith.constant 0 : index
    %c4_39 = arith.constant 4 : index
    %c0_40 = arith.constant 0 : index
    %115 = vector.load %arg6[%c0_38, %c4_39, %c0_40] : memref<8x8x128xf32, #tpu.memory_space<vmem>>, vector<8x1x128xf32>
    tpu.vector_store %arg6[%c0_38, %c4_39, %c0_40], %114 {strides = array<i32>} : memref<8x8x128xf32, #tpu.memory_space<vmem>>, vector<8x1x128xf32>,
    %cst_41 = arith.constant dense<0.000000e+00> : vector<8x512xf32>
    %116 = tpu.matmul %113, %3, %cst_41 {dimension_numbers = #tpu.dot_dimension_numbers<[1], [0], [0], [1], [0, 0, 1, 1], [], []>} : vector<8x128xf32>, vector<128x512xf32>, vector<8x512xf32> -> vector<8x512xf32>
    %c5 = arith.constant 5 : index
    %c0_42 = arith.constant 0 : index
    %c0_43 = arith.constant 0 : index
    %117 = vector.load %arg2[%c5, %c0_42, %c0_43] : memref<8x8x512xf32, #tpu.memory_space<vmem>>, vector<1x8x512xf32>
    %118 = vector.shape_cast %117 : vector<1x8x512xf32> to vector<8x512xf32>
    %119 = arith.addf %116, %118 : vector<8x512xf32>
    %120 = vector.extract_strided_slice %119 {offsets = [0, 0], sizes = [8, 384], strides = [1, 1]} : vector<8x512xf32> to vector<8x384xf32>
    %121 = arith.negf %120 : vector<8x384xf32>
    %122 = math.exp %121 : vector<8x384xf32>
    %cst_44 = arith.constant 1.000000e+00 : f32
    %123 = vector.broadcast %cst_44 : f32 to vector<8x384xf32>
    %124 = arith.addf %123, %122 : vector<8x384xf32>
    %125 = arith.divf %123, %124 : vector<8x384xf32>
    %126 = vector.extract_strided_slice %125 {offsets = [0, 0], sizes = [8, 128], strides = [1, 1]} : vector<8x384xf32> to vector<8x128xf32>
    %127 = vector.extract_strided_slice %125 {offsets = [0, 128], sizes = [8, 128], strides = [1, 1]} : vector<8x384xf32> to vector<8x128xf32>
    %128 = vector.extract_strided_slice %125 {offsets = [0, 256], sizes = [8, 128], strides = [1, 1]} : vector<8x384xf32> to vector<8x128xf32>
    %129 = vector.extract_strided_slice %119 {offsets = [0, 384], sizes = [8, 128], strides = [1, 1]} : vector<8x512xf32> to vector<8x128xf32>
    %130 = math.tanh %129 : vector<8x128xf32>
    %131 = arith.mulf %127, %111 : vector<8x128xf32>
    %132 = arith.mulf %126, %130 : vector<8x128xf32>
    %133 = arith.addf %131, %132 : vector<8x128xf32>
    %134 = math.tanh %133 : vector<8x128xf32>
    %135 = arith.mulf %128, %134 : vector<8x128xf32>
    %136 = vector.shape_cast %135 : vector<8x128xf32> to vector<8x1x128xf32>
    %c0_45 = arith.constant 0 : index
    %c5_46 = arith.constant 5 : index
    %c0_47 = arith.constant 0 : index
    %137 = vector.load %arg6[%c0_45, %c5_46, %c0_47] : memref<8x8x128xf32, #tpu.memory_space<vmem>>, vector<8x1x128xf32>
    tpu.vector_store %arg6[%c0_45, %c5_46, %c0_47], %136 {strides = array<i32>} : memref<8x8x128xf32, #tpu.memory_space<vmem>>, vector<8x1x128xf32>,
    %cst_48 = arith.constant dense<0.000000e+00> : vector<8x512xf32>
    %138 = tpu.matmul %135, %3, %cst_48 {dimension_numbers = #tpu.dot_dimension_numbers<[1], [0], [0], [1], [0, 0, 1, 1], [], []>} : vector<8x128xf32>, vector<128x512xf32>, vector<8x512xf32> -> vector<8x512xf32>
    %c6 = arith.constant 6 : index
    %c0_49 = arith.constant 0 : index
    %c0_50 = arith.constant 0 : index
    %139 = vector.load %arg2[%c6, %c0_49, %c0_50] : memref<8x8x512xf32, #tpu.memory_space<vmem>>, vector<1x8x512xf32>
    %140 = vector.shape_cast %139 : vector<1x8x512xf32> to vector<8x512xf32>
    %141 = arith.addf %138, %140 : vector<8x512xf32>
    %142 = vector.extract_strided_slice %141 {offsets = [0, 0], sizes = [8, 384], strides = [1, 1]} : vector<8x512xf32> to vector<8x384xf32>
    %143 = arith.negf %142 : vector<8x384xf32>
    %144 = math.exp %143 : vector<8x384xf32>
    %cst_51 = arith.constant 1.000000e+00 : f32
    %145 = vector.broadcast %cst_51 : f32 to vector<8x384xf32>
    %146 = arith.addf %145, %144 : vector<8x384xf32>
    %147 = arith.divf %145, %146 : vector<8x384xf32>
    %148 = vector.extract_strided_slice %147 {offsets = [0, 0], sizes = [8, 128], strides = [1, 1]} : vector<8x384xf32> to vector<8x128xf32>
    %149 = vector.extract_strided_slice %147 {offsets = [0, 128], sizes = [8, 128], strides = [1, 1]} : vector<8x384xf32> to vector<8x128xf32>
    %150 = vector.extract_strided_slice %147 {offsets = [0, 256], sizes = [8, 128], strides = [1, 1]} : vector<8x384xf32> to vector<8x128xf32>
    %151 = vector.extract_strided_slice %141 {offsets = [0, 384], sizes = [8, 128], strides = [1, 1]} : vector<8x512xf32> to vector<8x128xf32>
    %152 = math.tanh %151 : vector<8x128xf32>
    %153 = arith.mulf %149, %133 : vector<8x128xf32>
    %154 = arith.mulf %148, %152 : vector<8x128xf32>
    %155 = arith.addf %153, %154 : vector<8x128xf32>
    %156 = math.tanh %155 : vector<8x128xf32>
    %157 = arith.mulf %150, %156 : vector<8x128xf32>
    %158 = vector.shape_cast %157 : vector<8x128xf32> to vector<8x1x128xf32>
    %c0_52 = arith.constant 0 : index
    %c6_53 = arith.constant 6 : index
    %c0_54 = arith.constant 0 : index
    %159 = vector.load %arg6[%c0_52, %c6_53, %c0_54] : memref<8x8x128xf32, #tpu.memory_space<vmem>>, vector<8x1x128xf32>
    tpu.vector_store %arg6[%c0_52, %c6_53, %c0_54], %158 {strides = array<i32>} : memref<8x8x128xf32, #tpu.memory_space<vmem>>, vector<8x1x128xf32>,
    %cst_55 = arith.constant dense<0.000000e+00> : vector<8x512xf32>
    %160 = tpu.matmul %157, %3, %cst_55 {dimension_numbers = #tpu.dot_dimension_numbers<[1], [0], [0], [1], [0, 0, 1, 1], [], []>} : vector<8x128xf32>, vector<128x512xf32>, vector<8x512xf32> -> vector<8x512xf32>
    %c7 = arith.constant 7 : index
    %c0_56 = arith.constant 0 : index
    %c0_57 = arith.constant 0 : index
    %161 = vector.load %arg2[%c7, %c0_56, %c0_57] : memref<8x8x512xf32, #tpu.memory_space<vmem>>, vector<1x8x512xf32>
    %162 = vector.shape_cast %161 : vector<1x8x512xf32> to vector<8x512xf32>
    %163 = arith.addf %160, %162 : vector<8x512xf32>
    %164 = vector.extract_strided_slice %163 {offsets = [0, 0], sizes = [8, 384], strides = [1, 1]} : vector<8x512xf32> to vector<8x384xf32>
    %165 = arith.negf %164 : vector<8x384xf32>
    %166 = math.exp %165 : vector<8x384xf32>
    %cst_58 = arith.constant 1.000000e+00 : f32
    %167 = vector.broadcast %cst_58 : f32 to vector<8x384xf32>
    %168 = arith.addf %167, %166 : vector<8x384xf32>
    %169 = arith.divf %167, %168 : vector<8x384xf32>
    %170 = vector.extract_strided_slice %169 {offsets = [0, 0], sizes = [8, 128], strides = [1, 1]} : vector<8x384xf32> to vector<8x128xf32>
    %171 = vector.extract_strided_slice %169 {offsets = [0, 128], sizes = [8, 128], strides = [1, 1]} : vector<8x384xf32> to vector<8x128xf32>
    %172 = vector.extract_strided_slice %169 {offsets = [0, 256], sizes = [8, 128], strides = [1, 1]} : vector<8x384xf32> to vector<8x128xf32>
    %173 = vector.extract_strided_slice %163 {offsets = [0, 384], sizes = [8, 128], strides = [1, 1]} : vector<8x512xf32> to vector<8x128xf32>
    %174 = math.tanh %173 : vector<8x128xf32>
    %175 = arith.mulf %171, %155 : vector<8x128xf32>
    %176 = arith.mulf %170, %174 : vector<8x128xf32>
    %177 = arith.addf %175, %176 : vector<8x128xf32>
    %178 = math.tanh %177 : vector<8x128xf32>
    %179 = arith.mulf %172, %178 : vector<8x128xf32>
    %180 = vector.shape_cast %179 : vector<8x128xf32> to vector<8x1x128xf32>
    %c0_59 = arith.constant 0 : index
    %c7_60 = arith.constant 7 : index
    %c0_61 = arith.constant 0 : index
    %181 = vector.load %arg6[%c0_59, %c7_60, %c0_61] : memref<8x8x128xf32, #tpu.memory_space<vmem>>, vector<8x1x128xf32>
    tpu.vector_store %arg6[%c0_59, %c7_60, %c0_61], %180 {strides = array<i32>} : memref<8x8x128xf32, #tpu.memory_space<vmem>>, vector<8x1x128xf32>,
    %c0_62 = arith.constant 0 : index
    %c0_63 = arith.constant 0 : index
    %182 = vector.load %arg7[%c0_62, %c0_63] : memref<8x128xf32, #tpu.memory_space<vmem>>, vector<8x128xf32>
    tpu.vector_store %arg7[%c0_62, %c0_63], %179 {strides = array<i32>} : memref<8x128xf32, #tpu.memory_space<vmem>>, vector<8x128xf32>,
    %c0_64 = arith.constant 0 : index
    %c0_65 = arith.constant 0 : index
    %183 = vector.load %arg8[%c0_64, %c0_65] : memref<8x128xf32, #tpu.memory_space<vmem>>, vector<8x128xf32>
    tpu.vector_store %arg8[%c0_64, %c0_65], %177 {strides = array<i32>} : memref<8x128xf32, #tpu.memory_space<vmem>>, vector<8x128xf32>,
    return
  }
  func.func @transform_0(%arg0: i32, %arg1: i32) -> (i32, i32, i32) {
    %c0_i32 = arith.constant 0 : i32
    %c0_i32_0 = arith.constant 0 : i32
    return %arg1, %arg0, %c0_i32 : i32, i32, i32
  }
  func.func @transform_1(%arg0: i32, %arg1: i32) -> (i32, i32) {
    %c0_i32 = arith.constant 0 : i32
    %c0_i32_0 = arith.constant 0 : i32
    %c0_i32_1 = arith.constant 0 : i32
    return %c0_i32, %c0_i32_0 : i32, i32
  }
  func.func @transform_2(%arg0: i32, %arg1: i32) -> (i32, i32) {
    %c0_i32 = arith.constant 0 : i32
    %c0_i32_0 = arith.constant 0 : i32
    return %arg0, %c0_i32 : i32, i32
  }
  func.func @transform_3(%arg0: i32, %arg1: i32) -> (i32, i32) {
    %c0_i32 = arith.constant 0 : i32
    %c0_i32_0 = arith.constant 0 : i32
    return %arg0, %c0_i32 : i32, i32
  }
  func.func @transform_4(%arg0: i32, %arg1: i32) -> (i32, i32, i32) {
    %c0_i32 = arith.constant 0 : i32
    %c0_i32_0 = arith.constant 0 : i32
    return %arg0, %arg1, %c0_i32 : i32, i32, i32
  }
  func.func @transform_5(%arg0: i32, %arg1: i32) -> (i32, i32) {
    %c0_i32 = arith.constant 0 : i32
    %c0_i32_0 = arith.constant 0 : i32
    return %arg0, %c0_i32 : i32, i32
  }
  func.func @transform_6(%arg0: i32, %arg1: i32) -> (i32, i32) {
    %c0_i32 = arith.constant 0 : i32
    %c0_i32_0 = arith.constant 0 : i32
    return %arg0, %c0_i32 : i32, i32
  }
}

</mosaic_0001>

<bundles_post_ra>
// kernel: tpu_custom_call.1
= control target key start
LH: loop header
LB: loop body
LE: loop exit
PB: predicated region body
PF: predicated region fallthrough
CT: control target
= control target key end

     0   :  { %12 = vsyncpa [#allocation3], 0  ;;  %s2844_s0 = inlined_call_operand.hbm [shape: f32[8,8,512], index: 0, kind: input, shape index: {}]   ;;  %s2845_s1 = inlined_call_operand.hbm [shape: f32[128,512], index: 1, kind: input, shape index: {}]   ;;  %s2846_s2 = inlined_call_operand.hbm [shape: f32[8,128], index: 2, kind: input, shape index: {}]   ;;  %s2847_s3 = inlined_call_operand.hbm [shape: f32[8,128], index: 3, kind: input, shape index: {}]   ;;  %s2848_s4 = inlined_call_operand.hbm [shape: f32[8,8,128], index: 4, kind: output, shape index: {0}]   ;;  %s2849_s5 = inlined_call_operand.hbm [shape: f32[8,128], index: 5, kind: output, shape index: {1}]   ;;  %s2850_s6 = inlined_call_operand.hbm [shape: f32[8,128], index: 6, kind: output, shape index: {2}]  }
   0x1   :  { %13 = vsyncpa [#allocation6], 0 }
   0x2   :  { %14 = vsyncpa [#allocation9], 0 }
   0x3   :  { %15 = vsyncpa [#allocation4], 0 }
   0x4   :  { %16 = vsyncpa [#allocation12], 0  ;;  %s34_s23 = sshll.u32 %s2845_s1, 4  ;;  %s1981_s24 = smov [#allocation5]   ;;  %s35_s23 = int_to_ptr.hbm [resolvable:$true] %s34_s23 }
   0x5   :  { %s36_s25 = sshll.u32 %s1981_s24, 4  ;;  %s21_s28 = sshll.u32 %s2844_s0, 4  ;;  %s37_s25 = int_to_ptr.vmem [resolvable:$true] %s36_s25  ;;  %s22_s28 = int_to_ptr.hbm [resolvable:$true] %s21_s28 }
   0x6   :  { %s1982_s29 = smov 512   ;;  %s1983_s30 = smov 32  }
   0x7   :  { %42 = dma.hbm_to_vmem [thread:$0]  %s35_s23, 8192, %s37_s25, [#allocation6], %s1982_s29, %s1982_s29, %s1983_s30  }
   0x8   :  { %s1984_s7 = smov [#allocation2]   ;;  %s48_s11 = sshll.u32 %s2846_s2, 4  ;;  %s49_s11 = int_to_ptr.hbm [resolvable:$true] %s48_s11 }
   0x9   :  { %s23_s8 = sshll.u32 %s1984_s7, 4  ;;  %s59_s13 = sshll.u32 %s2847_s3, 4  ;;  %s24_s8 = int_to_ptr.vmem [resolvable:$true] %s23_s8  ;;  %s60_s13 = int_to_ptr.hbm [resolvable:$true] %s59_s13 }
   0xa   :  { %29 = dma.hbm_to_vmem [thread:$0]  %s22_s28, 4096, %s24_s8, [#allocation3], %s1982_s29, %s1982_s29, %s1983_s30  }
   0xb   :  { %s1985_s14 = smov [#allocation7]   ;;  %s1986_s0 = smov [#allocation8]  }
   0xc   :  { %s50_s15 = sshll.u32 %s1985_s14, 4  ;;  %s61_s16 = sshll.u32 %s1986_s0, 4  ;;  %s51_s15 = int_to_ptr.vmem [resolvable:$true] %s50_s15  ;;  %s62_s16 = int_to_ptr.vmem [resolvable:$true] %s61_s16 }
   0xd   :  { %53 = dma.hbm_to_vmem [thread:$0]  %s49_s11, 128, %s51_s15, [#allocation6]  }
   0xe   :  { %64 = dma.hbm_to_vmem [thread:$0]  %s60_s13, 128, %s62_s16, [#allocation9]  }
   0xf   :  { %1971 = dma.done.wait [#allocation3], 4096  }
  0x10   :  { %1972 = vsyncadd [#allocation3], 4294963200 }
  0x11   :  { %1973 = dma.done.wait [#allocation6], 8320  }
  0x12   :  { %1974 = vsyncadd [#allocation6], 4294958976 }
  0x13   :  { %1975 = dma.done.wait [#allocation9], 128  }
  0x14   :  { %1976 = vsyncadd [#allocation9], 4294967168  ;;  %v2039_v0 = vld [vmem:[#allocation5 + $0x1e0] sm:$0xff]  ;;  %v2041_v1 = vld [vmem:[#allocation5 + $0x1e8] sm:$0xff]  ;;  %s1987_s2 = smov [#allocation11]   ;;  %s1544_s19 = sshll.u32 %s2849_s5, 4  ;;  %s1545_s19 = int_to_ptr.hbm [resolvable:$true] %s1544_s19 }
  0x15   :  { %2959 = vst [vmem:[#allocation19_spill] sm:$0xff] %v2039_v0  ;;  %v2043_v2 = vld [vmem:[#allocation5 + $0x1f0] sm:$0xff]  ;;  %159 = vmatpush.msra.mxu0 %v2039_v0  ;;  %179 = vmatpush.msra.mxu1 %v2041_v1  ;;  %v2047_v3 = vld [vmem:[#allocation5 + $0x1c0] sm:$0xff]  ;;  %v2049_v4 = vld [vmem:[#allocation5 + $0x1c8] sm:$0xff]  ;;  %s1542_s3 = sshll.u32 %s1987_s2, 4  ;;  %s1988_s20 = smov [#allocation13]   ;;  %s1543_s3 = int_to_ptr.vmem [resolvable:$true] %s1542_s3 }
  0x16   :  { %v2051_v5 = vld [vmem:[#allocation5 + $0x1d0] sm:$0xff]  ;;  %199 = vmatpush.msra.mxu2 %v2043_v2  ;;  %v2054_v6 = vld [vmem:[#allocation5 + $0x1a0] sm:$0xff]  ;;  %v2056_v7 = vld [vmem:[#allocation5 + $0x1a8] sm:$0xff]  ;;  %s1553_s21 = sshll.u32 %s1988_s20, 4  ;;  %s1555_s24 = sshll.u32 %s2850_s6, 4  ;;  %s1554_s21 = int_to_ptr.vmem [resolvable:$true] %s1553_s21  ;;  %s1556_s24 = int_to_ptr.hbm [resolvable:$true] %s1555_s24 }
  0x17   :  { %160 = vmatpush.msra.mxu0 %v2047_v3  ;;  %180 = vmatpush.msra.mxu1 %v2049_v4  ;;  %v2060_v8 = vld [vmem:[#allocation5 + $0x1b0] sm:$0xff]  ;;  %v2063_v9 = vld [vmem:[#allocation5 + $0x180] sm:$0xff]  ;;  %v2065_v10 = vld [vmem:[#allocation5 + $0x188] sm:$0xff]  ;;  %s1989_s5 = smov [#allocation10]   ;;  %s1530_s28 = sshll.u32 %s2848_s4, 4  ;;  %s1531_s28 = int_to_ptr.hbm [resolvable:$true] %s1530_s28 }
  0x18   :  { %200 = vmatpush.msra.mxu2 %v2051_v5  ;;  %v2069_v11 = vld [vmem:[#allocation5 + $0x190] sm:$0xff]  ;;  %v2072_v12 = vld [vmem:[#allocation5 + $0x160] sm:$0xff]  ;;  %v2074_v13 = vld [vmem:[#allocation5 + $0x168] sm:$0xff]  ;;  %s1528_s25 = sshll.u32 %s1989_s5, 4  ;;  %s1990_s6 = smov 128   ;;  %s1529_s25 = int_to_ptr.vmem [resolvable:$true] %s1528_s25 }
  0x19   :  { %161 = vmatpush.msra.mxu0 %v2054_v6  ;;  %181 = vmatpush.msra.mxu1 %v2056_v7  ;;  %v2078_v14 = vld [vmem:[#allocation5 + $0x170] sm:$0xff]  ;;  %v2081_v15 = vld [vmem:[#allocation5 + $0x140] sm:$0xff]  ;;  %v2083_v16 = vld [vmem:[#allocation5 + $0x148] sm:$0xff]  ;;  %s1991_s29 = smov 8  }
  0x1a   :  { %201 = vmatpush.msra.mxu2 %v2060_v8  ;;  %v2085_v17 = vld [vmem:[#allocation5 + $0x1f8] sm:$0xff]  ;;  %v2089_v18 = vld [vmem:[#allocation5 + $0x150] sm:$0xff]  ;;  %v2094_v20 = vld [vmem:[#allocation5 + $0x120] sm:$0xff] }
  0x1b   :  { %162 = vmatpush.msra.mxu0 %v2063_v9  ;;  %182 = vmatpush.msra.mxu1 %v2065_v10  ;;  %v2091_v19 = vld [vmem:[#allocation5 + $0x1d8] sm:$0xff]  ;;  %v2096_v21 = vld [vmem:[#allocation5 + $0x128] sm:$0xff]  ;;  %v2101_v22 = vld [vmem:[#allocation5 + $0x130] sm:$0xff] }
  0x1c   :  { %202 = vmatpush.msra.mxu2 %v2069_v11  ;;  %219 = vmatpush.msra.mxu3 %v2085_v17  ;;  %v2103_v23 = vld [vmem:[#allocation5 + $0x1b8] sm:$0xff]  ;;  %v2106_v24 = vld [vmem:[#allocation5 + $0x100] sm:$0xff]  ;;  %v2108_v25 = vld [vmem:[#allocation5 + $0x108] sm:$0xff] }
  0x1d   :  { %163 = vmatpush.msra.mxu0 %v2072_v12  ;;  %183 = vmatpush.msra.mxu1 %v2074_v13  ;;  %v2113_v26 = vld [vmem:[#allocation5 + $0x110] sm:$0xff]  ;;  %v2115_v27 = vld [vmem:[#allocation5 + $0x198] sm:$0xff]  ;;  %v2118_v28 = vld [vmem:[#allocation5 + $0xe0] sm:$0xff] }
  0x1e   :  { %203 = vmatpush.msra.mxu2 %v2078_v14  ;;  %220 = vmatpush.msra.mxu3 %v2091_v19  ;;  %v2120_v29 = vld [vmem:[#allocation5 + $0xe8] sm:$0xff]  ;;  %v2125_v30 = vld [vmem:[#allocation5 + $0xf0] sm:$0xff]  ;;  %v2127_v31 = vld [vmem:[#allocation5 + $0x178] sm:$0xff] }
  0x1f   :  { %164 = vmatpush.msra.mxu0 %v2081_v15  ;;  %184 = vmatpush.msra.mxu1 %v2083_v16  ;;  %v2130_v32 = vld [vmem:[#allocation5 + $0xc0] sm:$0xff]  ;;  %v2132_v33 = vld [vmem:[#allocation5 + $0xc8] sm:$0xff]  ;;  %v2137_v34 = vld [vmem:[#allocation5 + $0xd0] sm:$0xff] }
  0x20   :  { %204 = vmatpush.msra.mxu2 %v2089_v18  ;;  %221 = vmatpush.msra.mxu3 %v2103_v23  ;;  %2960 = vst [vmem:[#allocation20_spill] sm:$0xff] %v2132_v33  ;;  %v2139_v35 = vld [vmem:[#allocation5 + $0x158] sm:$0xff]  ;;  %v2142_v36 = vld [vmem:[#allocation5 + $0xa0] sm:$0xff]  ;;  %v2144_v37 = vld [vmem:[#allocation5 + $0xa8] sm:$0xff] }
  0x21   :  { %165 = vmatpush.msra.mxu0 %v2094_v20  ;;  %185 = vmatpush.msra.mxu1 %v2096_v21  ;;  %2961 = vst [vmem:[#allocation21_spill] sm:$0xff] %v2137_v34  ;;  %v2149_v38 = vld [vmem:[#allocation5 + $0xb0] sm:$0xff]  ;;  %v2151_v39 = vld [vmem:[#allocation5 + $0x138] sm:$0xff]  ;;  %v2154_v40 = vld [vmem:[#allocation5 + $0x80] sm:$0xff] }
  0x22   :  { %205 = vmatpush.msra.mxu2 %v2101_v22  ;;  %222 = vmatpush.msra.mxu3 %v2115_v27  ;;  %2962 = vst [vmem:[#allocation22_spill] sm:$0xff] %v2142_v36  ;;  %v2156_v41 = vld [vmem:[#allocation5 + $0x88] sm:$0xff]  ;;  %v2161_v42 = vld [vmem:[#allocation5 + $0x90] sm:$0xff]  ;;  %v2163_v43 = vld [vmem:[#allocation5 + $0x118] sm:$0xff] }
  0x23   :  { %166 = vmatpush.msra.mxu0 %v2106_v24  ;;  %186 = vmatpush.msra.mxu1 %v2108_v25  ;;  %2963 = vst [vmem:[#allocation23_spill] sm:$0xff] %v2144_v37  ;;  %v2166_v44 = vld [vmem:[#allocation5 + $0x60] sm:$0xff]  ;;  %v2168_v45 = vld [vmem:[#allocation5 + $0x68] sm:$0xff]  ;;  %v2173_v46 = vld [vmem:[#allocation5 + $0x70] sm:$0xff] }
  0x24   :  { %206 = vmatpush.msra.mxu2 %v2113_v26  ;;  %223 = vmatpush.msra.mxu3 %v2127_v31  ;;  %2964 = vst [vmem:[#allocation24_spill] sm:$0xff] %v2149_v38  ;;  %v2175_v47 = vld [vmem:[#allocation5 + $0xf8] sm:$0xff]  ;;  %v2178_v48 = vld [vmem:[#allocation5 + $0x40] sm:$0xff]  ;;  %v2180_v49 = vld [vmem:[#allocation5 + $0x48] sm:$0xff] }
  0x25   :  { %167 = vmatpush.msra.mxu0 %v2118_v28  ;;  %187 = vmatpush.msra.mxu1 %v2120_v29  ;;  %2965 = vst [vmem:[#allocation25_spill] sm:$0xff] %v2154_v40  ;;  %v2185_v50 = vld [vmem:[#allocation5 + $0x50] sm:$0xff]  ;;  %v2187_v51 = vld [vmem:[#allocation5 + $0xd8] sm:$0xff]  ;;  %v2190_v52 = vld [vmem:[#allocation5 + $0x20] sm:$0xff] }
  0x26   :  { %207 = vmatpush.msra.mxu2 %v2125_v30  ;;  %2966 = vst [vmem:[#allocation26_spill] sm:$0xff] %v2156_v41  ;;  %224 = vmatpush.msra.mxu3 %v2139_v35  ;;  %v2192_v53 = vld [vmem:[#allocation5 + $0x28] sm:$0xff]  ;;  %v2197_v54 = vld [vmem:[#allocation5 + $0x30] sm:$0xff]  ;;  %v2199_v55 = vld [vmem:[#allocation5 + $0xb8] sm:$0xff] }
  0x27   :  { %168 = vmatpush.msra.mxu0 %v2130_v32  ;;  %188 = vmatpush.msra.mxu1 %v2132_v33  ;;  %2967 = vst [vmem:[#allocation27_spill] sm:$0xff] %v2161_v42  ;;  %v2202_v56 = vld [vmem:[#allocation5] sm:$0xff]  ;;  %v2204_v57 = vld [vmem:[#allocation5 + $0x8] sm:$0xff]  ;;  %v2209_v58 = vld [vmem:[#allocation5 + $0x10] sm:$0xff] }
  0x28   :  { %208 = vmatpush.msra.mxu2 %v2137_v34  ;;  %2968 = vst [vmem:[#allocation28_spill] sm:$0xff] %v2166_v44  ;;  %225 = vmatpush.msra.mxu3 %v2151_v39  ;;  %v85_v59 = vld [vmem:[#allocation7] sm:$0xff]  ;;  %v2215_v60 = vld [vmem:[#allocation5 + $0x98] sm:$0xff] }
  0x29   :  { %169 = vmatpush.msra.mxu0 %v2142_v36  ;;  %189 = vmatpush.msra.mxu1 %v2144_v37  ;;  %2969 = vst [vmem:[#allocation29_spill] sm:$0xff] %v2168_v45  ;;  %v2218_v61 = vld [vmem:[#allocation5 + $0x78] sm:$0xff] }
  0x2a   :  { %209 = vmatpush.msra.mxu2 %v2149_v38  ;;  %2970 = vst [vmem:[#allocation30_spill] sm:$0xff] %v2173_v46  ;;  %226 = vmatpush.msra.mxu3 %v2163_v43  ;;  %v2222_v62 = vld [vmem:[#allocation5 + $0x58] sm:$0xff] }
  0x2b   :  { %170 = vmatpush.msra.mxu0 %v2154_v40  ;;  %190 = vmatpush.msra.mxu1 %v2156_v41  ;;  %2971 = vst [vmem:[#allocation31_spill] sm:$0xff] %v2178_v48  ;;  %v2228_v63 = vld [vmem:[#allocation5 + $0x38] sm:$0xff] }
  0x2c   :  { %210 = vmatpush.msra.mxu2 %v2161_v42  ;;  %2972 = vst [vmem:[#allocation32_spill] sm:$0xff] %v2180_v49  ;;  %227 = vmatpush.msra.mxu3 %v2175_v47 }
  0x2d   :  { %171 = vmatpush.msra.mxu0 %v2166_v44  ;;  %191 = vmatpush.msra.mxu1 %v2168_v45  ;;  %2973 = vst [vmem:[#allocation33_spill] sm:$0xff] %v2185_v50 }
  0x2e   :  { %2974 = vst [vmem:[#allocation34_spill] sm:$0xff] %v2187_v51  ;;  %211 = vmatpush.msra.mxu2 %v2173_v46  ;;  %228 = vmatpush.msra.mxu3 %v2187_v51 }
  0x2f   :  { %2975 = vst [vmem:[#allocation35_spill] sm:$0xff] %v2190_v52  ;;  %172 = vmatpush.msra.mxu0 %v2178_v48  ;;  %192 = vmatpush.msra.mxu1 %v2180_v49 }
  0x30   :  { %2976 = vst [vmem:[#allocation36_spill] sm:$0xff] %v2192_v53  ;;  %212 = vmatpush.msra.mxu2 %v2185_v50  ;;  %229 = vmatpush.msra.mxu3 %v2199_v55 }
  0x31   :  { %2977 = vst [vmem:[#allocation37_spill] sm:$0xff] %v2197_v54  ;;  %173 = vmatpush.msra.mxu0 %v2190_v52  ;;  %193 = vmatpush.msra.mxu1 %v2192_v53 }
  0x32   :  { %2978 = vst [vmem:[#allocation38_spill] sm:$0xff] %v2199_v55  ;;  %213 = vmatpush.msra.mxu2 %v2197_v54  ;;  %230 = vmatpush.msra.mxu3 %v2215_v60 }
  0x33   :  { %2979 = vst [vmem:[#allocation39_spill] sm:$0xff] %v2202_v56  ;;  %174 = vmatpush.msra.mxu0 %v2202_v56  ;;  %194 = vmatpush.msra.mxu1 %v2204_v57 }
  0x34   :  { %2980 = vst [vmem:[#allocation40_spill] sm:$0xff] %v2204_v57  ;;  %214 = vmatpush.msra.mxu2 %v2209_v58  ;;  %175 = vmatmul.f32.vlgmr.msra.gmra.mxu0 %v85_v59 }
  0x35   :  { %2981 = vst [vmem:[#allocation41_spill] sm:$0xff] %v2209_v58  ;;  %195 = vmatmul.f32.vlgmr.msra.gmra.mxu1 %v85_v59  ;;  %215 = vmatmul.f32.vlgmr.msra.gmra.mxu2 %v85_v59 }
  0x36   :  { %2982 = vst [vmem:[#allocation42_spill] sm:$0xff] %v2215_v60  ;;  %330 = vmatpush.msrb.mxu0 %v2039_v0  ;;  %350 = vmatpush.msrb.mxu1 %v2041_v1  ;;  %v2234_v0 = vld [vmem:[#allocation5 + $0x18] sm:$0xff] }
  0x37   :  { %2983 = vst [vmem:[#allocation43_spill] sm:$0xff] %v2218_v61  ;;  %370 = vmatpush.msrb.mxu2 %v2043_v2  ;;  %231 = vmatpush.msra.mxu3 %v2218_v61 }
  0x38   :  { %2984 = vst [vmem:[#allocation44_spill] sm:$0xff] %v2222_v62  ;;  %331 = vmatpush.msrb.mxu0 %v2047_v3  ;;  %351 = vmatpush.msrb.mxu1 %v2049_v4 }
  0x39   :  { %2985 = vst [vmem:[#allocation45_spill] sm:$0xff] %v2228_v63  ;;  %371 = vmatpush.msrb.mxu2 %v2051_v5  ;;  %232 = vmatpush.msra.mxu3 %v2222_v62 }
  0x3a   :  { %332 = vmatpush.msrb.mxu0 %v2054_v6  ;;  %2986 = vst [vmem:[#allocation46_spill] sm:$0xff] %v2234_v0  ;;  %352 = vmatpush.msrb.mxu1 %v2056_v7 }
  0x3b   :  { %372 = vmatpush.msrb.mxu2 %v2060_v8  ;;  %233 = vmatpush.msra.mxu3 %v2228_v63 }
  0x3c   :  { %333 = vmatpush.msrb.mxu0 %v2063_v9  ;;  %353 = vmatpush.msrb.mxu1 %v2065_v10 }
  0x3d   :  { %373 = vmatpush.msrb.mxu2 %v2069_v11  ;;  %234 = vmatpush.msra.mxu3 %v2234_v0 }
  0x3e   :  { %334 = vmatpush.msrb.mxu0 %v2072_v12  ;;  %235 = vmatmul.f32.vlgmr.msra.gmra.mxu3 %v85_v59  ;;  %v2987_v59 = vld [vmem:[#allocation19_spill] sm:$0xff] }
  0x3f   :  { %354 = vmatpush.msrb.mxu1 %v2074_v13  ;;  %390 = vmatpush.msrb.mxu3 %v2085_v17 }
  0x40   :  { %374 = vmatpush.msrb.mxu2 %v2078_v14  ;;  %335 = vmatpush.msrb.mxu0 %v2081_v15 }
  0x41   :  { %355 = vmatpush.msrb.mxu1 %v2083_v16  ;;  %391 = vmatpush.msrb.mxu3 %v2091_v19 }
  0x42   :  { %375 = vmatpush.msrb.mxu2 %v2089_v18  ;;  %336 = vmatpush.msrb.mxu0 %v2094_v20 }
  0x43   :  { %356 = vmatpush.msrb.mxu1 %v2096_v21  ;;  %392 = vmatpush.msrb.mxu3 %v2103_v23 }
  0x44   :  { %376 = vmatpush.msrb.mxu2 %v2101_v22  ;;  %337 = vmatpush.msrb.mxu0 %v2106_v24 }
  0x45   :  { %357 = vmatpush.msrb.mxu1 %v2108_v25  ;;  %393 = vmatpush.msrb.mxu3 %v2115_v27 }
  0x46   :  { %377 = vmatpush.msrb.mxu2 %v2113_v26  ;;  %338 = vmatpush.msrb.mxu0 %v2118_v28 }
  0x47   :  { %358 = vmatpush.msrb.mxu1 %v2120_v29  ;;  %394 = vmatpush.msrb.mxu3 %v2127_v31 }
  0x48   :  { %378 = vmatpush.msrb.mxu2 %v2125_v30  ;;  %339 = vmatpush.msrb.mxu0 %v2130_v32 }
  0x49   :  { %359 = vmatpush.msrb.mxu1 %v2132_v33  ;;  %395 = vmatpush.msrb.mxu3 %v2139_v35 }
  0x4a   :  { %379 = vmatpush.msrb.mxu2 %v2137_v34  ;;  %340 = vmatpush.msrb.mxu0 %v2142_v36 }
  0x4b   :  { %360 = vmatpush.msrb.mxu1 %v2144_v37  ;;  %396 = vmatpush.msrb.mxu3 %v2151_v39 }
  0x4c   :  { %380 = vmatpush.msrb.mxu2 %v2149_v38  ;;  %341 = vmatpush.msrb.mxu0 %v2154_v40 }
  0x4d   :  { %361 = vmatpush.msrb.mxu1 %v2156_v41  ;;  %397 = vmatpush.msrb.mxu3 %v2163_v43 }
  0x4e   :  { %381 = vmatpush.msrb.mxu2 %v2161_v42  ;;  %342 = vmatpush.msrb.mxu0 %v2166_v44 }
  0x4f   :  { %362 = vmatpush.msrb.mxu1 %v2168_v45  ;;  %398 = vmatpush.msrb.mxu3 %v2175_v47 }
  0x50   :  { %382 = vmatpush.msrb.mxu2 %v2173_v46  ;;  %343 = vmatpush.msrb.mxu0 %v2178_v48 }
  0x51   :  { %363 = vmatpush.msrb.mxu1 %v2180_v49  ;;  %399 = vmatpush.msrb.mxu3 %v2187_v51 }
  0x52   :  { %383 = vmatpush.msrb.mxu2 %v2185_v50  ;;  %344 = vmatpush.msrb.mxu0 %v2190_v52 }
  0x53   :  { %364 = vmatpush.msrb.mxu1 %v2192_v53  ;;  %400 = vmatpush.msrb.mxu3 %v2199_v55 }
  0x54   :  { %384 = vmatpush.msrb.mxu2 %v2197_v54  ;;  %345 = vmatpush.msrb.mxu0 %v2202_v56 }
  0x55   :  { %365 = vmatpush.msrb.mxu1 %v2204_v57  ;;  %401 = vmatpush.msrb.mxu3 %v2215_v60 }
  0x56   :  { %385 = vmatpush.msrb.mxu2 %v2209_v58  ;;  %501 = vmatpush.msra.mxu0 %v2987_v59 }
  0x57   :  { %521 = vmatpush.msra.mxu1 %v2041_v1  ;;  %402 = vmatpush.msrb.mxu3 %v2218_v61 }
  0x58   :  { %541 = vmatpush.msra.mxu2 %v2043_v2  ;;  %502 = vmatpush.msra.mxu0 %v2047_v3 }
  0x59   :  { %522 = vmatpush.msra.mxu1 %v2049_v4  ;;  %403 = vmatpush.msrb.mxu3 %v2222_v62 }
  0x5a   :  { %542 = vmatpush.msra.mxu2 %v2051_v5  ;;  %503 = vmatpush.msra.mxu0 %v2054_v6 }
  0x5b   :  { %523 = vmatpush.msra.mxu1 %v2056_v7  ;;  %404 = vmatpush.msrb.mxu3 %v2228_v63 }
  0x5c   :  { %543 = vmatpush.msra.mxu2 %v2060_v8  ;;  %504 = vmatpush.msra.mxu0 %v2063_v9 }
  0x5d   :  { %524 = vmatpush.msra.mxu1 %v2065_v10  ;;  %405 = vmatpush.msrb.mxu3 %v2234_v0 }
  0x5e   :  { %544 = vmatpush.msra.mxu2 %v2069_v11  ;;  %505 = vmatpush.msra.mxu0 %v2072_v12 }
  0x5f   :  { %561 = vmatpush.msra.mxu3 %v2085_v17  ;;  %525 = vmatpush.msra.mxu1 %v2074_v13 }
  0x60   :  { %545 = vmatpush.msra.mxu2 %v2078_v14  ;;  %506 = vmatpush.msra.mxu0 %v2081_v15 }
  0x61   :  { %562 = vmatpush.msra.mxu3 %v2091_v19  ;;  %526 = vmatpush.msra.mxu1 %v2083_v16 }
  0x62   :  { %546 = vmatpush.msra.mxu2 %v2089_v18  ;;  %507 = vmatpush.msra.mxu0 %v2094_v20 }
  0x63   :  { %563 = vmatpush.msra.mxu3 %v2103_v23  ;;  %527 = vmatpush.msra.mxu1 %v2096_v21 }
  0x64   :  { %547 = vmatpush.msra.mxu2 %v2101_v22  ;;  %508 = vmatpush.msra.mxu0 %v2106_v24 }
  0x65   :  { %564 = vmatpush.msra.mxu3 %v2115_v27  ;;  %528 = vmatpush.msra.mxu1 %v2108_v25 }
  0x66   :  { %548 = vmatpush.msra.mxu2 %v2113_v26  ;;  %509 = vmatpush.msra.mxu0 %v2118_v28 }
  0x67   :  { %565 = vmatpush.msra.mxu3 %v2127_v31  ;;  %529 = vmatpush.msra.mxu1 %v2120_v29 }
  0x68   :  { %549 = vmatpush.msra.mxu2 %v2125_v30  ;;  %510 = vmatpush.msra.mxu0 %v2130_v32 }
  0x69   :  { %566 = vmatpush.msra.mxu3 %v2139_v35  ;;  %530 = vmatpush.msra.mxu1 %v2132_v33 }
  0x6a   :  { %550 = vmatpush.msra.mxu2 %v2137_v34  ;;  %511 = vmatpush.msra.mxu0 %v2142_v36 }
  0x6b   :  { %567 = vmatpush.msra.mxu3 %v2151_v39  ;;  %531 = vmatpush.msra.mxu1 %v2144_v37 }
  0x6c   :  { %551 = vmatpush.msra.mxu2 %v2149_v38  ;;  %512 = vmatpush.msra.mxu0 %v2154_v40 }
  0x6d   :  { %568 = vmatpush.msra.mxu3 %v2163_v43  ;;  %532 = vmatpush.msra.mxu1 %v2156_v41 }
  0x6e   :  { %552 = vmatpush.msra.mxu2 %v2161_v42  ;;  %513 = vmatpush.msra.mxu0 %v2166_v44 }
  0x6f   :  { %569 = vmatpush.msra.mxu3 %v2175_v47  ;;  %533 = vmatpush.msra.mxu1 %v2168_v45 }
  0x70   :  { %553 = vmatpush.msra.mxu2 %v2173_v46  ;;  %514 = vmatpush.msra.mxu0 %v2178_v48 }
  0x71   :  { %570 = vmatpush.msra.mxu3 %v2187_v51  ;;  %534 = vmatpush.msra.mxu1 %v2180_v49 }
  0x72   :  { %554 = vmatpush.msra.mxu2 %v2185_v50  ;;  %515 = vmatpush.msra.mxu0 %v2190_v52  ;;  %v155_v52 = vld [vmem:[#allocation2] sm:$0xff] }
  0x73   :  { %571 = vmatpush.msra.mxu3 %v2199_v55  ;;  %535 = vmatpush.msra.mxu1 %v2192_v53  ;;  %v156_v53 = vld [vmem:[#allocation2 + $0x8] sm:$0xff] }
  0x74   :  { %555 = vmatpush.msra.mxu2 %v2197_v54  ;;  %516 = vmatpush.msra.mxu0 %v2202_v56 }
  0x75   :  { %572 = vmatpush.msra.mxu3 %v2215_v60  ;;  %536 = vmatpush.msra.mxu1 %v2204_v57  ;;  %v157_v57 = vld [vmem:[#allocation2 + $0x10] sm:$0xff] }
  0x76   :  { %556 = vmatpush.msra.mxu2 %v2209_v58 }
  0x77   :  { %573 = vmatpush.msra.mxu3 %v2218_v61 }
  0x79   :  { %574 = vmatpush.msra.mxu3 %v2222_v62 }
  0x7b   :  { %575 = vmatpush.msra.mxu3 %v2228_v63 }
  0x7d   :  { %576 = vmatpush.msra.mxu3 %v2234_v0  ;;  %v158_v0 = vld [vmem:[#allocation2 + $0x18] sm:$0xff] }
  0xb1   :  { %v176_v50 = vpop.f32.mrf.mxu0 }
  0xb2   :  { %v177_v54 = vadd.f32 %v176_v50, %v155_v52  ;;  %v196_v49 = vpop.f32.mrf.mxu1 }
  0xb3   :  { %v197_v48 = vadd.f32 %v196_v49, %v156_v53 }
  0xb4   :  { %v1576_v46 = vmul.f32 -1.442695, %v177_v54 }
  0xb5   :  { %v1577_v56 = vmul.f32 -1.442695, %v197_v48 }
  0xb6   :  { %1611 = vpow2.f32 %v1576_v46 }
  0xb7   :  { %1613 = vpow2.f32 %v1577_v56 }
  0xb8   :  { %v216_v58 = vpop.f32.mrf.mxu2 }
  0xb9   :  { %v217_v45 = vadd.f32 %v216_v58, %v157_v57 }
  0xbb   :  { %v1578_v61 = vmul.f32 -1.442695, %v217_v45 }
  0xbc   :  { %v1612_v44 = vpop.eup %1611 }
  0xbd   :  { %v1614_v62 = vpop.eup %1613  ;;  %v248_v60 = vadd.f32 1.0, %v1612_v44  ;;  %1615 = vpow2.f32 %v1578_v61 }
  0xbe   :  { %v249_v63 = vadd.f32 1.0, %v1614_v62 }
  0xbf   :  { %1617 = vrcp.f32 %v248_v60  ;;  %v262_v57 = vand.u32 2147483648, %v248_v60  ;;  %v260_v61 = vand.u32 2147483647, %v248_v60  ;;  %vm256_vm2 = vweird.f32 %v248_v60 }
  0xc0   :  { %1619 = vrcp.f32 %v249_v63  ;;  %v277_v58 = vand.u32 2147483648, %v249_v63  ;;  %v275_v41 = vand.u32 2147483647, %v249_v63  ;;  %vm271_vm3 = vweird.f32 %v249_v63 }
  0xc1   :  { %v236_v42 = vpop.f32.mrf.mxu3  ;;  %vm261_vm6 = vcmp.eq.f32.partialorder %v260_v61, 8.507059e+37  ;;  %v3001_v61 = vld [vmem:[#allocation30_spill] sm:$0xff] }
  0xc2   :  { %v237_v52 = vadd.f32 %v236_v42, %v158_v0  ;;  %vm276_vm7 = vcmp.eq.f32.partialorder %v275_v41, 8.507059e+37 }
  0xc3   :  { %v1616_v50 = vpop.eup %1615 }
  0xc4   :  { %v250_v49 = vadd.f32 1.0, %v1616_v50  ;;  %v263_v50 = vor.u32 1.1754944e-38, %v262_v57 }
  0xc5   :  { %v1618_v53 = vpop.eup %1617 }
  0xc6   :  { %v1620_v48 = vpop.eup %1619  ;;  %v252_v46 = vmul.f32 %v1618_v53, %v248_v60  ;;  %1621 = vrcp.f32 %v250_v49  ;;  %vm257_vm0 = vweird.f32 %v1618_v53  ;;  %v292_v33 = vand.u32 2147483648, %v250_v49 }
  0xc7   :  { %v267_v54 = vmul.f32 %v1620_v48, %v249_v63  ;;  %1623 = vtanh.f32 %v237_v52  ;;  %vm272_vm1 = vweird.f32 %v1620_v48  ;;  %vm258_vm4 = vmor %vm256_vm2, %vm257_vm0  ;;  %v278_v52 = vor.u32 1.1754944e-38, %v277_v58 }
  0xc8   :  { %v253_v56 = vsub.f32 1.0, %v252_v46  ;;  %vm273_vm5 = vmor %vm271_vm3, %vm272_vm1  ;;  %v87_v46 = vld [vmem:[#allocation8] sm:$0xff]  ;;  %vm286_vm9 = vweird.f32 %v250_v49  ;;  %v290_v57 = vand.u32 2147483647, %v250_v49 }
  0xc9   :  { %v268_v45 = vsub.f32 1.0, %v267_v54 }
  0xca   :  { %v254_v44 = vmul.f32 %v1618_v53, %v253_v56  ;;  %vm291_vm11 = vcmp.eq.f32.partialorder %v290_v57, 8.507059e+37  ;;  %v3013_v57 = vld [vmem:[#allocation41_spill] sm:$0xff] }
  0xcb   :  { %v269_v62 = vmul.f32 %v1620_v48, %v268_v45 }
  0xcc   :  { %v1622_v40 = vpop.eup %1621  ;;  %v255_v55 = vadd.f32 %v1618_v53, %v254_v44 }
  0xcd   :  { %v1624_v0 = vpop.eup %1623  ;;  %v282_v42 = vmul.f32 %v1622_v40, %v250_v49  ;;  %v270_v38 = vadd.f32 %v1620_v48, %v269_v62  ;;  %vm287_vm8 = vweird.f32 %v1622_v40  ;;  %v3000_v49 = vld [vmem:[#allocation29_spill] sm:$0xff]  ;;  %v3002_v62 = vld [vmem:[#allocation43_spill] sm:$0xff] }
  0xce   :  { %v259_v54 = vsel %vm258_vm4, %v1618_v53, %v255_v55  ;;  %vm288_vm10 = vmor %vm286_vm9, %vm287_vm8  ;;  %v293_v53 = vor.u32 1.1754944e-38, %v292_v33 }
  0xcf   :  { %v283_v56 = vsub.f32 1.0, %v282_v42  ;;  %v264_v37 = vsel %vm261_vm6, %v263_v50, %v259_v54  ;;  %v274_v36 = vsel %vm273_vm5, %v1620_v48, %v270_v38  ;;  %v3004_v42 = vld [vmem:[#allocation32_spill] sm:$0xff]  ;;  %v3005_v50 = vld [vmem:[#allocation33_spill] sm:$0xff] }
  0xd0   :  { %v279_v45 = vsel %vm276_vm7, %v278_v52, %v274_v36  ;;  %v298_v51 = vmul.f32 %v1624_v0, %v264_v37  ;;  %v3003_v0 = vld [vmem:[#allocation31_spill] sm:$0xff]  ;;  %v3006_v52 = vld [vmem:[#allocation44_spill] sm:$0xff] }
  0xd1   :  { %v284_v34 = vmul.f32 %v1622_v40, %v283_v56  ;;  %v297_v44 = vmul.f32 %v279_v45, %v87_v46  ;;  %v3007_v46 = vld [vmem:[#allocation35_spill] sm:$0xff]  ;;  %v3008_v54 = vld [vmem:[#allocation36_spill] sm:$0xff]  ;;  %v3009_v56 = vld [vmem:[#allocation37_spill] sm:$0xff] }
  0xd2   :  { %v3010_v45 = vld [vmem:[#allocation45_spill] sm:$0xff] }
  0xd3   :  { %v2359_v60 = vadd.f32 %v298_v51, %v297_v44  ;;  %v285_v63 = vadd.f32 %v1622_v40, %v284_v34  ;;  %v3011_v44 = vld [vmem:[#allocation39_spill] sm:$0xff] }
  0xd5   :  { %1625 = vtanh.f32 %v2359_v60  ;;  %v289_v55 = vsel %vm288_vm10, %v1622_v40, %v285_v63  ;;  %v3012_v63 = vld [vmem:[#allocation40_spill] sm:$0xff] }
  0xd6   :  { %v294_v38 = vsel %vm291_vm11, %v293_v53, %v289_v55  ;;  %v3014_v55 = vld [vmem:[#allocation46_spill] sm:$0xff]  ;;  %v326_v53 = vld [vmem:[#allocation2 + $0x20] sm:$0xff] }
  0xdb   :  { %v1626_v58 = vpop.eup %1625 }
  0xdc   :  { %v301_v41 = vmul.f32 %v1626_v58, %v294_v38  ;;  %v327_v58 = vld [vmem:[#allocation2 + $0x28] sm:$0xff] }
  0xde   :  { %v303_v36 = vrot.slane %v301_v41, 1  ;;  %v304_v37 = vrot.slane %v301_v41, 2  ;;  %v305_v48 = vrot.slane %v301_v41, 3  ;;  %317 = vst [vmem:[#allocation10] sm:$0x1] %v301_v41  ;;  %346 = vmatmul.f32.vlgmr.msrb.gmra.mxu0 %v301_v41  ;;  %366 = vmatmul.f32.vlgmr.msrb.gmra.mxu1 %v301_v41  ;;  %v306_v34 = vrot.slane %v301_v41, 4 }
  0xdf   :  { %386 = vmatmul.f32.vlgmr.msrb.gmra.mxu2 %v301_v41  ;;  %406 = vmatmul.f32.vlgmr.msrb.gmra.mxu3 %v301_v41  ;;  %v307_v51 = vrot.slane %v301_v41, 5  ;;  %v308_v33 = vrot.slane %v301_v41, 6  ;;  %v309_v40 = vrot.slane %v301_v41, 7 }
  0xe0   :  { %318 = vst [vmem:[#allocation10 + $0x8] sm:$0x1] %v303_v36  ;;  %672 = vmatpush.msrb.mxu0 %v2987_v59  ;;  %692 = vmatpush.msrb.mxu1 %v2041_v1 }
  0xe1   :  { %319 = vst [vmem:[#allocation10 + $0x10] sm:$0x1] %v304_v37  ;;  %712 = vmatpush.msrb.mxu2 %v2043_v2  ;;  %732 = vmatpush.msrb.mxu3 %v2085_v17  ;;  %v2988_v2 = vld [vmem:[#allocation20_spill] sm:$0xff] }
  0xe2   :  { %320 = vst [vmem:[#allocation10 + $0x18] sm:$0x1] %v305_v48  ;;  %673 = vmatpush.msrb.mxu0 %v2047_v3  ;;  %693 = vmatpush.msrb.mxu1 %v2049_v4  ;;  %v2989_v3 = vld [vmem:[#allocation21_spill] sm:$0xff]  ;;  %v2990_v4 = vld [vmem:[#allocation34_spill] sm:$0xff] }
  0xe3   :  { %321 = vst [vmem:[#allocation10 + $0x20] sm:$0x1] %v306_v34  ;;  %713 = vmatpush.msrb.mxu2 %v2051_v5  ;;  %733 = vmatpush.msrb.mxu3 %v2091_v19  ;;  %v2991_v5 = vld [vmem:[#allocation22_spill] sm:$0xff] }
  0xe4   :  { %322 = vst [vmem:[#allocation10 + $0x28] sm:$0x1] %v307_v51  ;;  %674 = vmatpush.msrb.mxu0 %v2054_v6  ;;  %694 = vmatpush.msrb.mxu1 %v2056_v7  ;;  %v2992_v6 = vld [vmem:[#allocation23_spill] sm:$0xff]  ;;  %v2993_v7 = vld [vmem:[#allocation24_spill] sm:$0xff]  ;;  %v328_v51 = vld [vmem:[#allocation2 + $0x30] sm:$0xff] }
  0xe5   :  { %323 = vst [vmem:[#allocation10 + $0x30] sm:$0x1] %v308_v33  ;;  %714 = vmatpush.msrb.mxu2 %v2060_v8  ;;  %734 = vmatpush.msrb.mxu3 %v2103_v23  ;;  %v2994_v8 = vld [vmem:[#allocation38_spill] sm:$0xff] }
  0xe6   :  { %324 = vst [vmem:[#allocation10 + $0x38] sm:$0x1] %v309_v40  ;;  %675 = vmatpush.msrb.mxu0 %v2063_v9  ;;  %695 = vmatpush.msrb.mxu1 %v2065_v10  ;;  %v2995_v9 = vld [vmem:[#allocation25_spill] sm:$0xff]  ;;  %v2996_v10 = vld [vmem:[#allocation26_spill] sm:$0xff] }
  0xe7   :  { %715 = vmatpush.msrb.mxu2 %v2069_v11  ;;  %735 = vmatpush.msrb.mxu3 %v2115_v27  ;;  %v2997_v11 = vld [vmem:[#allocation27_spill] sm:$0xff] }
  0xe8   :  { %676 = vmatpush.msrb.mxu0 %v2072_v12  ;;  %696 = vmatpush.msrb.mxu1 %v2074_v13  ;;  %v2998_v12 = vld [vmem:[#allocation42_spill] sm:$0xff]  ;;  %v2999_v13 = vld [vmem:[#allocation28_spill] sm:$0xff] }
  0xe9   :  { %716 = vmatpush.msrb.mxu2 %v2078_v14  ;;  %736 = vmatpush.msrb.mxu3 %v2127_v31 }
  0xea   :  { %677 = vmatpush.msrb.mxu0 %v2081_v15  ;;  %697 = vmatpush.msrb.mxu1 %v2083_v16 }
  0xeb   :  { %717 = vmatpush.msrb.mxu2 %v2089_v18  ;;  %737 = vmatpush.msrb.mxu3 %v2139_v35 }
  0xec   :  { %678 = vmatpush.msrb.mxu0 %v2094_v20  ;;  %698 = vmatpush.msrb.mxu1 %v2096_v21 }
  0xed   :  { %718 = vmatpush.msrb.mxu2 %v2101_v22  ;;  %738 = vmatpush.msrb.mxu3 %v2151_v39 }
  0xee   :  { %679 = vmatpush.msrb.mxu0 %v2106_v24  ;;  %699 = vmatpush.msrb.mxu1 %v2108_v25 }
  0xef   :  { %719 = vmatpush.msrb.mxu2 %v2113_v26  ;;  %739 = vmatpush.msrb.mxu3 %v2163_v43 }
  0xf0   :  { %680 = vmatpush.msrb.mxu0 %v2118_v28  ;;  %700 = vmatpush.msrb.mxu1 %v2120_v29 }
  0xf1   :  { %720 = vmatpush.msrb.mxu2 %v2125_v30  ;;  %740 = vmatpush.msrb.mxu3 %v2175_v47 }
  0xf2   :  { %681 = vmatpush.msrb.mxu0 %v2130_v32  ;;  %701 = vmatpush.msrb.mxu1 %v2988_v2 }
  0xf3   :  { %721 = vmatpush.msrb.mxu2 %v2989_v3  ;;  %741 = vmatpush.msrb.mxu3 %v2990_v4 }
  0xf4   :  { %682 = vmatpush.msrb.mxu0 %v2991_v5  ;;  %702 = vmatpush.msrb.mxu1 %v2992_v6 }
  0xf5   :  { %722 = vmatpush.msrb.mxu2 %v2993_v7  ;;  %742 = vmatpush.msrb.mxu3 %v2994_v8 }
  0xf6   :  { %683 = vmatpush.msrb.mxu0 %v2995_v9  ;;  %703 = vmatpush.msrb.mxu1 %v2996_v10 }
  0xf7   :  { %723 = vmatpush.msrb.mxu2 %v2997_v11  ;;  %743 = vmatpush.msrb.mxu3 %v2998_v12 }
  0xf8   :  { %684 = vmatpush.msrb.mxu0 %v2999_v13  ;;  %704 = vmatpush.msrb.mxu1 %v3000_v49 }
  0xf9   :  { %724 = vmatpush.msrb.mxu2 %v3001_v61  ;;  %744 = vmatpush.msrb.mxu3 %v3002_v62 }
  0xfa   :  { %685 = vmatpush.msrb.mxu0 %v3003_v0  ;;  %705 = vmatpush.msrb.mxu1 %v3004_v42 }
  0xfb   :  { %725 = vmatpush.msrb.mxu2 %v3005_v50  ;;  %745 = vmatpush.msrb.mxu3 %v3006_v52 }
  0xfc   :  { %686 = vmatpush.msrb.mxu0 %v3007_v46  ;;  %706 = vmatpush.msrb.mxu1 %v3008_v54 }
  0xfd   :  { %726 = vmatpush.msrb.mxu2 %v3009_v56  ;;  %746 = vmatpush.msrb.mxu3 %v3010_v45 }
  0xfe   :  { %687 = vmatpush.msrb.mxu0 %v3011_v44  ;;  %707 = vmatpush.msrb.mxu1 %v3012_v63 }
  0xff   :  { %727 = vmatpush.msrb.mxu2 %v3013_v57  ;;  %747 = vmatpush.msrb.mxu3 %v3014_v55  ;;  %v329_v55 = vld [vmem:[#allocation2 + $0x38] sm:$0xff] }
 0x15b   :  { %v347_v38 = vpop.f32.mrf.mxu0  ;;  %v367_v41 = vpop.f32.mrf.mxu1 }
 0x15c   :  { %v348_v36 = vadd.f32 %v347_v38, %v326_v53  ;;  %v368_v37 = vadd.f32 %v367_v41, %v327_v58 }
 0x15e   :  { %v1579_v48 = vmul.f32 -1.442695, %v348_v36  ;;  %v1580_v34 = vmul.f32 -1.442695, %v368_v37 }
 0x160   :  { %1627 = vpow2.f32 %v1579_v48 }
 0x161   :  { %1629 = vpow2.f32 %v1580_v34 }
 0x162   :  { %v387_v33 = vpop.f32.mrf.mxu2  ;;  %v407_v54 = vpop.f32.mrf.mxu3 }
 0x163   :  { %v388_v40 = vadd.f32 %v387_v33, %v328_v51  ;;  %v408_v38 = vadd.f32 %v407_v54, %v329_v55 }
 0x165   :  { %v1581_v44 = vmul.f32 -1.442695, %v388_v40 }
 0x166   :  { %v1628_v45 = vpop.eup %1627 }
 0x167   :  { %v1630_v63 = vpop.eup %1629  ;;  %v419_v56 = vadd.f32 1.0, %v1628_v45  ;;  %1631 = vpow2.f32 %v1581_v44 }
 0x168   :  { %v420_v57 = vadd.f32 1.0, %v1630_v63 }
 0x169   :  { %1633 = vrcp.f32 %v419_v56  ;;  %v433_v51 = vand.u32 2147483648, %v419_v56  ;;  %v431_v44 = vand.u32 2147483647, %v419_v56  ;;  %vm427_vm14 = vweird.f32 %v419_v56 }
 0x16a   :  { %1635 = vrcp.f32 %v420_v57  ;;  %v448_v33 = vand.u32 2147483648, %v420_v57  ;;  %v446_v40 = vand.u32 2147483647, %v420_v57  ;;  %vm442_vm15 = vweird.f32 %v420_v57 }
 0x16b   :  { %v434_v54 = vor.u32 1.1754944e-38, %v433_v51  ;;  %vm432_vm2 = vcmp.eq.f32.partialorder %v431_v44, 8.507059e+37 }
 0x16c   :  { %vm447_vm3 = vcmp.eq.f32.partialorder %v446_v40, 8.507059e+37 }
 0x16d   :  { %v1632_v46 = vpop.eup %1631 }
 0x16e   :  { %v421_v53 = vadd.f32 1.0, %v1632_v46 }
 0x16f   :  { %v1634_v58 = vpop.eup %1633 }
 0x170   :  { %v1636_v41 = vpop.eup %1635  ;;  %v423_v36 = vmul.f32 %v1634_v58, %v419_v56  ;;  %1637 = vrcp.f32 %v421_v53  ;;  %vm428_vm12 = vweird.f32 %v1634_v58  ;;  %v463_v51 = vand.u32 2147483648, %v421_v53 }
 0x171   :  { %v438_v37 = vmul.f32 %v1636_v41, %v420_v57  ;;  %1639 = vtanh.f32 %v408_v38  ;;  %vm443_vm13 = vweird.f32 %v1636_v41  ;;  %vm429_vm0 = vmor %vm427_vm14, %vm428_vm12  ;;  %vm457_vm5 = vweird.f32 %v421_v53 }
 0x172   :  { %v424_v48 = vsub.f32 1.0, %v423_v36  ;;  %vm444_vm1 = vmor %vm442_vm15, %vm443_vm13  ;;  %v449_v36 = vor.u32 1.1754944e-38, %v448_v33  ;;  %v464_v33 = vor.u32 1.1754944e-38, %v463_v51 }
 0x173   :  { %v439_v34 = vsub.f32 1.0, %v438_v37 }
 0x174   :  { %v425_v45 = vmul.f32 %v1634_v58, %v424_v48 }
 0x175   :  { %v440_v63 = vmul.f32 %v1636_v41, %v439_v34 }
 0x176   :  { %v1638_v52 = vpop.eup %1637  ;;  %v426_v50 = vadd.f32 %v1634_v58, %v425_v45 }
 0x177   :  { %v453_v46 = vmul.f32 %v1638_v52, %v421_v53  ;;  %v441_v55 = vadd.f32 %v1636_v41, %v440_v63  ;;  %v1640_v38 = vpop.eup %1639  ;;  %vm458_vm4 = vweird.f32 %v1638_v52 }
 0x178   :  { %v430_v37 = vsel %vm429_vm0, %v1634_v58, %v426_v50  ;;  %v461_v50 = vand.u32 2147483647, %v421_v53  ;;  %vm459_vm6 = vmor %vm457_vm5, %vm458_vm4 }
 0x179   :  { %v454_v42 = vsub.f32 1.0, %v453_v46  ;;  %v435_v48 = vsel %vm432_vm2, %v434_v54, %v430_v37  ;;  %v445_v0 = vsel %vm444_vm1, %v1636_v41, %v441_v55  ;;  %v2436_v46 = vld [vmem:[#allocation5 + $0x1c0] sm:$0xff]  ;;  %v2439_v54 = vld [vmem:[#allocation5 + $0x1c8] sm:$0xff]  ;;  %v2452_v55 = vld [vmem:[#allocation5 + $0x1b0] sm:$0xff] }
 0x17a   :  { %v450_v34 = vsel %vm447_vm3, %v449_v36, %v445_v0  ;;  %v469_v62 = vmul.f32 %v1640_v38, %v435_v48  ;;  %vm462_vm7 = vcmp.eq.f32.partialorder %v461_v50, 8.507059e+37  ;;  %v2456_v36 = vld [vmem:[#allocation5 + $0x180] sm:$0xff]  ;;  %v2462_v37 = vld [vmem:[#allocation5 + $0x190] sm:$0xff] }
 0x17b   :  { %v455_v61 = vmul.f32 %v1638_v52, %v454_v42  ;;  %v468_v45 = vmul.f32 %v450_v34, %v2359_v60  ;;  %v2466_v38 = vld [vmem:[#allocation5 + $0x160] sm:$0xff] }
 0x17d   :  { %v2427_v56 = vadd.f32 %v469_v62, %v468_v45  ;;  %v456_v57 = vadd.f32 %v1638_v52, %v455_v61 }
 0x17f   :  { %1641 = vtanh.f32 %v2427_v56  ;;  %v460_v58 = vsel %vm459_vm6, %v1638_v52, %v456_v57  ;;  %v2432_v52 = vld [vmem:[#allocation5 + $0x1f0] sm:$0xff] }
 0x180   :  { %v465_v44 = vsel %vm462_vm7, %v464_v33, %v460_v58 }
 0x185   :  { %v1642_v41 = vpop.eup %1641 }
 0x186   :  { %v472_v0 = vmul.f32 %v1642_v41, %v465_v44 }
 0x188   :  { %v474_v63 = vrot.slane %v472_v0, 1  ;;  %v475_v42 = vrot.slane %v472_v0, 2  ;;  %v476_v40 = vrot.slane %v472_v0, 3  ;;  %488 = vst [vmem:[#allocation10 + $0x1] sm:$0x1] %v472_v0  ;;  %517 = vmatmul.f32.vlgmr.msra.gmra.mxu0 %v472_v0  ;;  %537 = vmatmul.f32.vlgmr.msra.gmra.mxu1 %v472_v0  ;;  %v477_v60 = vrot.slane %v472_v0, 4 }
 0x189   :  { %557 = vmatmul.f32.vlgmr.msra.gmra.mxu2 %v472_v0  ;;  %577 = vmatmul.f32.vlgmr.msra.gmra.mxu3 %v472_v0  ;;  %v478_v61 = vrot.slane %v472_v0, 5  ;;  %v479_v62 = vrot.slane %v472_v0, 6  ;;  %v480_v53 = vrot.slane %v472_v0, 7 }
 0x18a   :  { %489 = vst [vmem:[#allocation10 + $0x9] sm:$0x1] %v474_v63  ;;  %843 = vmatpush.msra.mxu0 %v2987_v59  ;;  %863 = vmatpush.msra.mxu1 %v2041_v1  ;;  %v2442_v1 = vld [vmem:[#allocation5 + $0x1d0] sm:$0xff]  ;;  %v2446_v59 = vld [vmem:[#allocation5 + $0x1a0] sm:$0xff] }
 0x18b   :  { %490 = vst [vmem:[#allocation10 + $0x11] sm:$0x1] %v475_v42  ;;  %883 = vmatpush.msra.mxu2 %v2432_v52  ;;  %903 = vmatpush.msra.mxu3 %v2085_v17  ;;  %v2449_v17 = vld [vmem:[#allocation5 + $0x1a8] sm:$0xff] }
 0x18c   :  { %491 = vst [vmem:[#allocation10 + $0x19] sm:$0x1] %v476_v40  ;;  %844 = vmatpush.msra.mxu0 %v2436_v46  ;;  %864 = vmatpush.msra.mxu1 %v2439_v54 }
 0x18d   :  { %492 = vst [vmem:[#allocation10 + $0x21] sm:$0x1] %v477_v60  ;;  %884 = vmatpush.msra.mxu2 %v2442_v1  ;;  %904 = vmatpush.msra.mxu3 %v2091_v19  ;;  %v2459_v19 = vld [vmem:[#allocation5 + $0x188] sm:$0xff] }
 0x18e   :  { %493 = vst [vmem:[#allocation10 + $0x29] sm:$0x1] %v478_v61  ;;  %845 = vmatpush.msra.mxu0 %v2446_v59  ;;  %865 = vmatpush.msra.mxu1 %v2449_v17 }
 0x18f   :  { %494 = vst [vmem:[#allocation10 + $0x31] sm:$0x1] %v479_v62  ;;  %885 = vmatpush.msra.mxu2 %v2452_v55  ;;  %905 = vmatpush.msra.mxu3 %v2103_v23  ;;  %v2469_v23 = vld [vmem:[#allocation5 + $0x168] sm:$0xff] }
 0x190   :  { %495 = vst [vmem:[#allocation10 + $0x39] sm:$0x1] %v480_v53  ;;  %846 = vmatpush.msra.mxu0 %v2456_v36  ;;  %866 = vmatpush.msra.mxu1 %v2459_v19 }
 0x191   :  { %886 = vmatpush.msra.mxu2 %v2462_v37  ;;  %906 = vmatpush.msra.mxu3 %v2115_v27  ;;  %v3025_v27 = vld [vmem:[#allocation39_spill] sm:$0xff] }
 0x192   :  { %847 = vmatpush.msra.mxu0 %v2466_v38  ;;  %867 = vmatpush.msra.mxu1 %v2469_v23 }
 0x193   :  { %887 = vmatpush.msra.mxu2 %v2078_v14  ;;  %907 = vmatpush.msra.mxu3 %v2127_v31  ;;  %v3015_v14 = vld [vmem:[#allocation30_spill] sm:$0xff]  ;;  %v497_v31 = vld [vmem:[#allocation2 + $0x40] sm:$0xff] }
 0x194   :  { %848 = vmatpush.msra.mxu0 %v2081_v15  ;;  %868 = vmatpush.msra.mxu1 %v2083_v16  ;;  %v3016_v15 = vld [vmem:[#allocation43_spill] sm:$0xff] }
 0x195   :  { %888 = vmatpush.msra.mxu2 %v2089_v18  ;;  %908 = vmatpush.msra.mxu3 %v2139_v35  ;;  %v3017_v16 = vld [vmem:[#allocation31_spill] sm:$0xff]  ;;  %v3018_v18 = vld [vmem:[#allocation32_spill] sm:$0xff] }
 0x196   :  { %849 = vmatpush.msra.mxu0 %v2094_v20  ;;  %869 = vmatpush.msra.mxu1 %v2096_v21  ;;  %v3019_v20 = vld [vmem:[#allocation33_spill] sm:$0xff]  ;;  %v3020_v21 = vld [vmem:[#allocation44_spill] sm:$0xff] }
 0x197   :  { %889 = vmatpush.msra.mxu2 %v2101_v22  ;;  %909 = vmatpush.msra.mxu3 %v2151_v39  ;;  %v3021_v22 = vld [vmem:[#allocation35_spill] sm:$0xff] }
 0x198   :  { %850 = vmatpush.msra.mxu0 %v2106_v24  ;;  %870 = vmatpush.msra.mxu1 %v2108_v25  ;;  %v3022_v24 = vld [vmem:[#allocation36_spill] sm:$0xff]  ;;  %v3023_v25 = vld [vmem:[#allocation37_spill] sm:$0xff] }
 0x199   :  { %890 = vmatpush.msra.mxu2 %v2113_v26  ;;  %910 = vmatpush.msra.mxu3 %v2163_v43  ;;  %v3024_v26 = vld [vmem:[#allocation45_spill] sm:$0xff] }
 0x19a   :  { %851 = vmatpush.msra.mxu0 %v2118_v28  ;;  %871 = vmatpush.msra.mxu1 %v2120_v29  ;;  %v3026_v28 = vld [vmem:[#allocation40_spill] sm:$0xff]  ;;  %v3027_v29 = vld [vmem:[#allocation41_spill] sm:$0xff] }
 0x19b   :  { %891 = vmatpush.msra.mxu2 %v2125_v30  ;;  %911 = vmatpush.msra.mxu3 %v2175_v47  ;;  %v3028_v30 = vld [vmem:[#allocation46_spill] sm:$0xff] }
 0x19c   :  { %852 = vmatpush.msra.mxu0 %v2130_v32  ;;  %872 = vmatpush.msra.mxu1 %v2988_v2  ;;  %v498_v32 = vld [vmem:[#allocation2 + $0x48] sm:$0xff] }
 0x19d   :  { %892 = vmatpush.msra.mxu2 %v2989_v3  ;;  %912 = vmatpush.msra.mxu3 %v2990_v4  ;;  %v499_v4 = vld [vmem:[#allocation2 + $0x50] sm:$0xff] }
 0x19e   :  { %853 = vmatpush.msra.mxu0 %v2991_v5  ;;  %873 = vmatpush.msra.mxu1 %v2992_v6 }
 0x19f   :  { %893 = vmatpush.msra.mxu2 %v2993_v7  ;;  %913 = vmatpush.msra.mxu3 %v2994_v8 }
 0x1a0   :  { %854 = vmatpush.msra.mxu0 %v2995_v9  ;;  %874 = vmatpush.msra.mxu1 %v2996_v10 }
 0x1a1   :  { %894 = vmatpush.msra.mxu2 %v2997_v11  ;;  %914 = vmatpush.msra.mxu3 %v2998_v12  ;;  %v500_v12 = vld [vmem:[#allocation2 + $0x58] sm:$0xff] }
 0x1a2   :  { %855 = vmatpush.msra.mxu0 %v2999_v13  ;;  %875 = vmatpush.msra.mxu1 %v3000_v49 }
 0x1a3   :  { %895 = vmatpush.msra.mxu2 %v3015_v14  ;;  %915 = vmatpush.msra.mxu3 %v3016_v15 }
 0x1a4   :  { %856 = vmatpush.msra.mxu0 %v3017_v16  ;;  %876 = vmatpush.msra.mxu1 %v3018_v18 }
 0x1a5   :  { %896 = vmatpush.msra.mxu2 %v3019_v20  ;;  %916 = vmatpush.msra.mxu3 %v3020_v21 }
 0x1a6   :  { %857 = vmatpush.msra.mxu0 %v3021_v22  ;;  %877 = vmatpush.msra.mxu1 %v3022_v24 }
 0x1a7   :  { %897 = vmatpush.msra.mxu2 %v3023_v25  ;;  %917 = vmatpush.msra.mxu3 %v3024_v26 }
 0x1a8   :  { %858 = vmatpush.msra.mxu0 %v3025_v27  ;;  %878 = vmatpush.msra.mxu1 %v3026_v28 }
 0x1a9   :  { %898 = vmatpush.msra.mxu2 %v3027_v29  ;;  %918 = vmatpush.msra.mxu3 %v3028_v30 }
 0x205   :  { %v518_v35 = vpop.f32.mrf.mxu0  ;;  %v538_v39 = vpop.f32.mrf.mxu1 }
 0x206   :  { %v519_v43 = vadd.f32 %v518_v35, %v497_v31  ;;  %v539_v47 = vadd.f32 %v538_v39, %v498_v32 }
 0x208   :  { %v1582_v2 = vmul.f32 -1.442695, %v519_v43  ;;  %v1583_v3 = vmul.f32 -1.442695, %v539_v47 }
 0x20a   :  { %1643 = vpow2.f32 %v1582_v2 }
 0x20b   :  { %1645 = vpow2.f32 %v1583_v3 }
 0x20c   :  { %v558_v5 = vpop.f32.mrf.mxu2  ;;  %v578_v13 = vpop.f32.mrf.mxu3 }
 0x20d   :  { %v559_v6 = vadd.f32 %v558_v5, %v499_v4  ;;  %v579_v45 = vadd.f32 %v578_v13, %v500_v12  ;;  %v2541_v12 = vld [vmem:[#allocation5 + $0x1b8] sm:$0xff] }
 0x20e   :  { %v2547_v13 = vld [vmem:[#allocation5 + $0x198] sm:$0xff] }
 0x20f   :  { %v1584_v7 = vmul.f32 -1.442695, %v559_v6  ;;  %v2522_v6 = vld [vmem:[#allocation5 + $0x1e0] sm:$0xff] }
 0x210   :  { %v1644_v8 = vpop.eup %1643 }
 0x211   :  { %v1646_v9 = vpop.eup %1645  ;;  %v590_v10 = vadd.f32 1.0, %v1644_v8  ;;  %1647 = vpow2.f32 %v1584_v7  ;;  %v2525_v7 = vld [vmem:[#allocation5 + $0x1e8] sm:$0xff] }
 0x212   :  { %v591_v11 = vadd.f32 1.0, %v1646_v9  ;;  %v2529_v9 = vld [vmem:[#allocation5 + $0x1f8] sm:$0xff] }
 0x213   :  { %1649 = vrcp.f32 %v590_v10  ;;  %v604_v41 = vand.u32 2147483648, %v590_v10  ;;  %v602_v63 = vand.u32 2147483647, %v590_v10  ;;  %vm598_vm10 = vweird.f32 %v590_v10 }
 0x214   :  { %1651 = vrcp.f32 %v591_v11  ;;  %v619_v44 = vand.u32 2147483648, %v591_v11  ;;  %v617_v40 = vand.u32 2147483647, %v591_v11  ;;  %vm613_vm11 = vweird.f32 %v591_v11 }
 0x215   :  { %v605_v53 = vor.u32 1.1754944e-38, %v604_v41  ;;  %vm603_vm14 = vcmp.eq.f32.partialorder %v602_v63, 8.507059e+37  ;;  %v2579_v41 = vld [vmem:[#allocation5 + $0x138] sm:$0xff]  ;;  %v2588_v63 = vld [vmem:[#allocation5 + $0x110] sm:$0xff] }
 0x216   :  { %v620_v15 = vor.u32 1.1754944e-38, %v619_v44  ;;  %vm618_vm15 = vcmp.eq.f32.partialorder %v617_v40, 8.507059e+37  ;;  %v2582_v44 = vld [vmem:[#allocation5 + $0x100] sm:$0xff] }
 0x217   :  { %v1648_v49 = vpop.eup %1647  ;;  %v2594_v40 = vld [vmem:[#allocation5 + $0xe0] sm:$0xff] }
 0x218   :  { %v592_v48 = vadd.f32 1.0, %v1648_v49  ;;  %v2552_v49 = vld [vmem:[#allocation5 + $0x170] sm:$0xff] }
 0x219   :  { %v1650_v34 = vpop.eup %1649 }
 0x21a   :  { %v1652_v57 = vpop.eup %1651  ;;  %v594_v51 = vmul.f32 %v1650_v34, %v590_v10  ;;  %1653 = vrcp.f32 %v592_v48  ;;  %vm599_vm8 = vweird.f32 %v1650_v34  ;;  %v634_v30 = vand.u32 2147483648, %v592_v48 }
 0x21b   :  { %v609_v50 = vmul.f32 %v1652_v57, %v591_v11  ;;  %1655 = vtanh.f32 %v579_v45  ;;  %vm614_vm9 = vweird.f32 %v1652_v57  ;;  %vm600_vm12 = vmor %vm598_vm10, %vm599_vm8  ;;  %vm628_vm1 = vweird.f32 %v592_v48  ;;  %v2535_v11 = vld [vmem:[#allocation5 + $0x1d8] sm:$0xff]  ;;  %v2561_v45 = vld [vmem:[#allocation5 + $0x148] sm:$0xff] }
 0x21c   :  { %v595_v58 = vsub.f32 1.0, %v594_v51  ;;  %vm615_vm13 = vmor %vm613_vm11, %vm614_vm9  ;;  %v632_v31 = vand.u32 2147483647, %v592_v48  ;;  %v635_v35 = vor.u32 1.1754944e-38, %v634_v30  ;;  %v2567_v51 = vld [vmem:[#allocation5 + $0x158] sm:$0xff]  ;;  %v2645_v30 = vld [vmem:[#allocation5 + $0x68] sm:$0xff] }
 0x21d   :  { %v610_v33 = vsub.f32 1.0, %v609_v50  ;;  %v2570_v50 = vld [vmem:[#allocation5 + $0x120] sm:$0xff]  ;;  %3040 = vst [vmem:[#allocation42_spill] sm:$0xff] %v2645_v30 }
 0x21e   :  { %v596_v0 = vmul.f32 %v1650_v34, %v595_v58  ;;  %vm633_vm3 = vcmp.eq.f32.partialorder %v632_v31, 8.507059e+37  ;;  %v2573_v58 = vld [vmem:[#allocation5 + $0x128] sm:$0xff]  ;;  %v2648_v31 = vld [vmem:[#allocation5 + $0x70] sm:$0xff] }
 0x21f   :  { %v611_v42 = vmul.f32 %v1652_v57, %v610_v33  ;;  %v2576_v33 = vld [vmem:[#allocation5 + $0x130] sm:$0xff]  ;;  %3041 = vst [vmem:[#allocation28_spill] sm:$0xff] %v2648_v31 }
 0x220   :  { %v1654_v60 = vpop.eup %1653  ;;  %v597_v61 = vadd.f32 %v1650_v34, %v596_v0  ;;  %v2585_v0 = vld [vmem:[#allocation5 + $0x108] sm:$0xff] }
 0x221   :  { %v624_v62 = vmul.f32 %v1654_v60, %v592_v48  ;;  %v612_v14 = vadd.f32 %v1652_v57, %v611_v42  ;;  %v1656_v18 = vpop.eup %1655  ;;  %vm629_vm0 = vweird.f32 %v1654_v60  ;;  %v2555_v48 = vld [vmem:[#allocation5 + $0x178] sm:$0xff] }
 0x222   :  { %v601_v16 = vsel %vm600_vm12, %v1650_v34, %v597_v61  ;;  %vm630_vm2 = vmor %vm628_vm1, %vm629_vm0  ;;  %v2558_v34 = vld [vmem:[#allocation5 + $0x140] sm:$0xff]  ;;  %v2591_v42 = vld [vmem:[#allocation5 + $0x118] sm:$0xff] }
 0x223   :  { %v625_v20 = vsub.f32 1.0, %v624_v62  ;;  %v606_v21 = vsel %vm603_vm14, %v605_v53, %v601_v16  ;;  %v616_v22 = vsel %vm615_vm13, %v1652_v57, %v612_v14  ;;  %v2564_v57 = vld [vmem:[#allocation5 + $0x150] sm:$0xff]  ;;  %v2603_v62 = vld [vmem:[#allocation5 + $0xf8] sm:$0xff]  ;;  %v2606_v53 = vld [vmem:[#allocation5 + $0xc0] sm:$0xff] }
 0x224   :  { %v621_v24 = vsel %vm618_vm15, %v620_v15, %v616_v22  ;;  %v640_v25 = vmul.f32 %v1656_v18, %v606_v21  ;;  %v2600_v61 = vld [vmem:[#allocation5 + $0xf0] sm:$0xff]  ;;  %v2609_v14 = vld [vmem:[#allocation5 + $0xc8] sm:$0xff]  ;;  %v2615_v16 = vld [vmem:[#allocation5 + $0xd8] sm:$0xff] }
 0x225   :  { %v626_v26 = vmul.f32 %v1654_v60, %v625_v20  ;;  %v639_v27 = vmul.f32 %v621_v24, %v2427_v56  ;;  %v2612_v15 = vld [vmem:[#allocation5 + $0xd0] sm:$0xff]  ;;  %3030 = vst [vmem:[#allocation20_spill] sm:$0xff] %v2615_v16  ;;  %v2618_v18 = vld [vmem:[#allocation5 + $0xa0] sm:$0xff]  ;;  %v2621_v20 = vld [vmem:[#allocation5 + $0xa8] sm:$0xff] }
 0x226   :  { %3029 = vst [vmem:[#allocation19_spill] sm:$0xff] %v2612_v15  ;;  %v2624_v21 = vld [vmem:[#allocation5 + $0xb0] sm:$0xff]  ;;  %v2627_v22 = vld [vmem:[#allocation5 + $0xb8] sm:$0xff]  ;;  %v2630_v24 = vld [vmem:[#allocation5 + $0x80] sm:$0xff] }
 0x227   :  { %v2519_v28 = vadd.f32 %v640_v25, %v639_v27  ;;  %v627_v29 = vadd.f32 %v1654_v60, %v626_v26  ;;  %3031 = vst [vmem:[#allocation21_spill] sm:$0xff] %v2618_v18  ;;  %v2633_v25 = vld [vmem:[#allocation5 + $0x88] sm:$0xff]  ;;  %v2636_v26 = vld [vmem:[#allocation5 + $0x90] sm:$0xff]  ;;  %v2639_v27 = vld [vmem:[#allocation5 + $0x98] sm:$0xff] }
 0x228   :  { %3032 = vst [vmem:[#allocation34_spill] sm:$0xff] %v2621_v20 }
 0x229   :  { %1657 = vtanh.f32 %v2519_v28  ;;  %v631_v32 = vsel %vm630_vm2, %v1654_v60, %v627_v29  ;;  %v2597_v60 = vld [vmem:[#allocation5 + $0xe8] sm:$0xff]  ;;  %3033 = vst [vmem:[#allocation22_spill] sm:$0xff] %v2624_v21  ;;  %v2642_v29 = vld [vmem:[#allocation5 + $0x60] sm:$0xff] }
 0x22a   :  { %v636_v43 = vsel %vm633_vm3, %v635_v35, %v631_v32  ;;  %3034 = vst [vmem:[#allocation23_spill] sm:$0xff] %v2627_v22  ;;  %v2651_v32 = vld [vmem:[#allocation5 + $0x78] sm:$0xff]  ;;  %v2654_v35 = vld [vmem:[#allocation5 + $0x40] sm:$0xff] }
 0x22b   :  { %3035 = vst [vmem:[#allocation24_spill] sm:$0xff] %v2630_v24 }
 0x22c   :  { %3036 = vst [vmem:[#allocation38_spill] sm:$0xff] %v2633_v25 }
 0x22d   :  { %3037 = vst [vmem:[#allocation25_spill] sm:$0xff] %v2636_v26 }
 0x22e   :  { %3038 = vst [vmem:[#allocation26_spill] sm:$0xff] %v2639_v27 }
 0x22f   :  { %v1658_v39 = vpop.eup %1657  ;;  %3039 = vst [vmem:[#allocation27_spill] sm:$0xff] %v2642_v29 }
 0x230   :  { %v643_v47 = vmul.f32 %v1658_v39, %v636_v43  ;;  %3042 = vst [vmem:[#allocation29_spill] sm:$0xff] %v2651_v32  ;;  %v2657_v39 = vld [vmem:[#allocation5 + $0x48] sm:$0xff]  ;;  %v2660_v43 = vld [vmem:[#allocation5 + $0x50] sm:$0xff] }
 0x231   :  { %3043 = vst [vmem:[#allocation30_spill] sm:$0xff] %v2654_v35 }
 0x232   :  { %v645_v2 = vrot.slane %v643_v47, 1  ;;  %v646_v3 = vrot.slane %v643_v47, 2  ;;  %v647_v4 = vrot.slane %v643_v47, 3  ;;  %659 = vst [vmem:[#allocation10 + $0x2] sm:$0x1] %v643_v47  ;;  %688 = vmatmul.f32.vlgmr.msrb.gmra.mxu0 %v643_v47  ;;  %708 = vmatmul.f32.vlgmr.msrb.gmra.mxu1 %v643_v47  ;;  %v648_v56 = vrot.slane %v643_v47, 4 }
 0x233   :  { %728 = vmatmul.f32.vlgmr.msrb.gmra.mxu2 %v643_v47  ;;  %748 = vmatmul.f32.vlgmr.msrb.gmra.mxu3 %v643_v47  ;;  %v649_v5 = vrot.slane %v643_v47, 5  ;;  %v650_v8 = vrot.slane %v643_v47, 6  ;;  %v651_v10 = vrot.slane %v643_v47, 7  ;;  %3044 = vst [vmem:[#allocation43_spill] sm:$0xff] %v2657_v39  ;;  %v2663_v47 = vld [vmem:[#allocation5 + $0x58] sm:$0xff] }
 0x234   :  { %660 = vst [vmem:[#allocation10 + $0xa] sm:$0x1] %v645_v2  ;;  %1014 = vmatpush.msrb.mxu0 %v2522_v6  ;;  %1034 = vmatpush.msrb.mxu1 %v2525_v7  ;;  %v2666_v2 = vld [vmem:[#allocation5 + $0x20] sm:$0xff] }
 0x235   :  { %661 = vst [vmem:[#allocation10 + $0x12] sm:$0x1] %v646_v3  ;;  %1054 = vmatpush.msrb.mxu2 %v2432_v52  ;;  %1074 = vmatpush.msrb.mxu3 %v2529_v9  ;;  %v2669_v3 = vld [vmem:[#allocation5 + $0x28] sm:$0xff] }
 0x236   :  { %662 = vst [vmem:[#allocation10 + $0x1a] sm:$0x1] %v647_v4  ;;  %1015 = vmatpush.msrb.mxu0 %v2436_v46  ;;  %1035 = vmatpush.msrb.mxu1 %v2439_v54  ;;  %v2672_v4 = vld [vmem:[#allocation5 + $0x30] sm:$0xff] }
 0x237   :  { %663 = vst [vmem:[#allocation10 + $0x22] sm:$0x1] %v648_v56  ;;  %1055 = vmatpush.msrb.mxu2 %v2442_v1  ;;  %1075 = vmatpush.msrb.mxu3 %v2535_v11  ;;  %v2675_v56 = vld [vmem:[#allocation5 + $0x38] sm:$0xff] }
 0x238   :  { %664 = vst [vmem:[#allocation10 + $0x2a] sm:$0x1] %v649_v5  ;;  %1016 = vmatpush.msrb.mxu0 %v2446_v59  ;;  %1036 = vmatpush.msrb.mxu1 %v2449_v17  ;;  %v2678_v5 = vld [vmem:[#allocation5] sm:$0xff] }
 0x239   :  { %665 = vst [vmem:[#allocation10 + $0x32] sm:$0x1] %v650_v8  ;;  %1056 = vmatpush.msrb.mxu2 %v2452_v55  ;;  %1076 = vmatpush.msrb.mxu3 %v2541_v12  ;;  %v2681_v8 = vld [vmem:[#allocation5 + $0x8] sm:$0xff] }
 0x23a   :  { %666 = vst [vmem:[#allocation10 + $0x3a] sm:$0x1] %v651_v10  ;;  %1017 = vmatpush.msrb.mxu0 %v2456_v36  ;;  %1037 = vmatpush.msrb.mxu1 %v2459_v19  ;;  %v2684_v10 = vld [vmem:[#allocation5 + $0x10] sm:$0xff] }
 0x23b   :  { %1057 = vmatpush.msrb.mxu2 %v2462_v37  ;;  %1077 = vmatpush.msrb.mxu3 %v2547_v13  ;;  %3045 = vst [vmem:[#allocation31_spill] sm:$0xff] %v2660_v43 }
 0x23c   :  { %1018 = vmatpush.msrb.mxu0 %v2466_v38  ;;  %1038 = vmatpush.msrb.mxu1 %v2469_v23  ;;  %3046 = vst [vmem:[#allocation32_spill] sm:$0xff] %v2663_v47 }
 0x23d   :  { %1058 = vmatpush.msrb.mxu2 %v2552_v49  ;;  %1078 = vmatpush.msrb.mxu3 %v2555_v48  ;;  %3047 = vst [vmem:[#allocation33_spill] sm:$0xff] %v2666_v2 }
 0x23e   :  { %1019 = vmatpush.msrb.mxu0 %v2558_v34  ;;  %1039 = vmatpush.msrb.mxu1 %v2561_v45  ;;  %3048 = vst [vmem:[#allocation44_spill] sm:$0xff] %v2669_v3 }
 0x23f   :  { %1059 = vmatpush.msrb.mxu2 %v2564_v57  ;;  %1079 = vmatpush.msrb.mxu3 %v2567_v51  ;;  %3049 = vst [vmem:[#allocation35_spill] sm:$0xff] %v2672_v4 }
 0x240   :  { %1020 = vmatpush.msrb.mxu0 %v2570_v50  ;;  %1040 = vmatpush.msrb.mxu1 %v2573_v58  ;;  %3050 = vst [vmem:[#allocation36_spill] sm:$0xff] %v2675_v56 }
 0x241   :  { %1060 = vmatpush.msrb.mxu2 %v2576_v33  ;;  %1080 = vmatpush.msrb.mxu3 %v2579_v41  ;;  %3051 = vst [vmem:[#allocation37_spill] sm:$0xff] %v2678_v5 }
 0x242   :  { %1021 = vmatpush.msrb.mxu0 %v2582_v44  ;;  %1041 = vmatpush.msrb.mxu1 %v2585_v0  ;;  %3052 = vst [vmem:[#allocation45_spill] sm:$0xff] %v2681_v8 }
 0x243   :  { %1061 = vmatpush.msrb.mxu2 %v2588_v63  ;;  %1081 = vmatpush.msrb.mxu3 %v2591_v42  ;;  %3053 = vst [vmem:[#allocation39_spill] sm:$0xff] %v2684_v10 }
 0x244   :  { %1022 = vmatpush.msrb.mxu0 %v2594_v40  ;;  %1042 = vmatpush.msrb.mxu1 %v2597_v60 }
 0x245   :  { %1062 = vmatpush.msrb.mxu2 %v2600_v61  ;;  %1082 = vmatpush.msrb.mxu3 %v2603_v62 }
 0x246   :  { %1023 = vmatpush.msrb.mxu0 %v2606_v53  ;;  %1043 = vmatpush.msrb.mxu1 %v2609_v14 }
 0x247   :  { %1063 = vmatpush.msrb.mxu2 %v2612_v15  ;;  %1083 = vmatpush.msrb.mxu3 %v2615_v16 }
 0x248   :  { %1024 = vmatpush.msrb.mxu0 %v2618_v18  ;;  %1044 = vmatpush.msrb.mxu1 %v2621_v20 }
 0x249   :  { %1064 = vmatpush.msrb.mxu2 %v2624_v21  ;;  %1084 = vmatpush.msrb.mxu3 %v2627_v22 }
 0x24a   :  { %1025 = vmatpush.msrb.mxu0 %v2630_v24  ;;  %1045 = vmatpush.msrb.mxu1 %v2633_v25 }
 0x24b   :  { %1065 = vmatpush.msrb.mxu2 %v2636_v26  ;;  %1085 = vmatpush.msrb.mxu3 %v2639_v27 }
 0x24c   :  { %1026 = vmatpush.msrb.mxu0 %v2642_v29  ;;  %1046 = vmatpush.msrb.mxu1 %v2645_v30 }
 0x24d   :  { %1066 = vmatpush.msrb.mxu2 %v2648_v31  ;;  %1086 = vmatpush.msrb.mxu3 %v2651_v32  ;;  %v670_v32 = vld [vmem:[#allocation2 + $0x70] sm:$0xff] }
 0x24e   :  { %1027 = vmatpush.msrb.mxu0 %v2654_v35  ;;  %1047 = vmatpush.msrb.mxu1 %v2657_v39 }
 0x24f   :  { %1067 = vmatpush.msrb.mxu2 %v2660_v43  ;;  %1087 = vmatpush.msrb.mxu3 %v2663_v47 }
 0x250   :  { %1028 = vmatpush.msrb.mxu0 %v2666_v2  ;;  %1048 = vmatpush.msrb.mxu1 %v2669_v3  ;;  %v2687_v3 = vld [vmem:[#allocation5 + $0x18] sm:$0xff]  ;;  %v669_v2 = vld [vmem:[#allocation2 + $0x68] sm:$0xff] }
 0x251   :  { %1068 = vmatpush.msrb.mxu2 %v2672_v4  ;;  %1088 = vmatpush.msrb.mxu3 %v2675_v56  ;;  %3054 = vst [vmem:[#allocation40_spill] sm:$0xff] %v2687_v3  ;;  %v668_v4 = vld [vmem:[#allocation2 + $0x60] sm:$0xff] }
 0x252   :  { %1029 = vmatpush.msrb.mxu0 %v2678_v5  ;;  %1049 = vmatpush.msrb.mxu1 %v2681_v8 }
 0x253   :  { %1069 = vmatpush.msrb.mxu2 %v2684_v10  ;;  %1089 = vmatpush.msrb.mxu3 %v2687_v3  ;;  %v671_v3 = vld [vmem:[#allocation2 + $0x78] sm:$0xff] }
 0x2af   :  { %v689_v47 = vpop.f32.mrf.mxu0  ;;  %v709_v56 = vpop.f32.mrf.mxu1 }
 0x2b0   :  { %v690_v43 = vadd.f32 %v689_v47, %v668_v4  ;;  %v710_v39 = vadd.f32 %v709_v56, %v669_v2 }
 0x2b2   :  { %v1585_v35 = vmul.f32 -1.442695, %v690_v43  ;;  %v1586_v5 = vmul.f32 -1.442695, %v710_v39 }
 0x2b4   :  { %1659 = vpow2.f32 %v1585_v35 }
 0x2b5   :  { %1661 = vpow2.f32 %v1586_v5 }
 0x2b6   :  { %v729_v8 = vpop.f32.mrf.mxu2  ;;  %v749_v25 = vpop.f32.mrf.mxu3 }
 0x2b7   :  { %v730_v31 = vadd.f32 %v729_v8, %v670_v32  ;;  %v750_v43 = vadd.f32 %v749_v25, %v671_v3 }
 0x2b9   :  { %v1587_v30 = vmul.f32 -1.442695, %v730_v31 }
 0x2ba   :  { %v1660_v29 = vpop.eup %1659 }
 0x2bb   :  { %v1662_v10 = vpop.eup %1661  ;;  %v761_v27 = vadd.f32 1.0, %v1660_v29  ;;  %1663 = vpow2.f32 %v1587_v30 }
 0x2bc   :  { %v762_v26 = vadd.f32 1.0, %v1662_v10 }
 0x2bd   :  { %1665 = vrcp.f32 %v761_v27  ;;  %v775_v31 = vand.u32 2147483648, %v761_v27  ;;  %v773_v30 = vand.u32 2147483647, %v761_v27  ;;  %vm769_vm6 = vweird.f32 %v761_v27 }
 0x2be   :  { %1667 = vrcp.f32 %v762_v26  ;;  %v790_v5 = vand.u32 2147483648, %v762_v26  ;;  %v788_v10 = vand.u32 2147483647, %v762_v26  ;;  %vm784_vm7 = vweird.f32 %v762_v26 }
 0x2bf   :  { %v776_v25 = vor.u32 1.1754944e-38, %v775_v31  ;;  %vm774_vm10 = vcmp.eq.f32.partialorder %v773_v30, 8.507059e+37 }
 0x2c0   :  { %vm789_vm11 = vcmp.eq.f32.partialorder %v788_v10, 8.507059e+37 }
 0x2c1   :  { %v1664_v24 = vpop.eup %1663 }
 0x2c2   :  { %v763_v47 = vadd.f32 1.0, %v1664_v24 }
 0x2c3   :  { %v1666_v2 = vpop.eup %1665 }
 0x2c4   :  { %v1668_v39 = vpop.eup %1667  ;;  %v765_v35 = vmul.f32 %v1666_v2, %v761_v27  ;;  %1669 = vrcp.f32 %v763_v47  ;;  %vm770_vm4 = vweird.f32 %v1666_v2  ;;  %v805_v31 = vand.u32 2147483648, %v763_v47 }
 0x2c5   :  { %v780_v4 = vmul.f32 %v1668_v39, %v762_v26  ;;  %1671 = vtanh.f32 %v750_v43  ;;  %vm785_vm5 = vweird.f32 %v1668_v39  ;;  %vm771_vm8 = vmor %vm769_vm6, %vm770_vm4  ;;  %vm799_vm13 = vweird.f32 %v763_v47 }
 0x2c6   :  { %v766_v56 = vsub.f32 1.0, %v765_v35  ;;  %vm786_vm9 = vmor %vm784_vm7, %vm785_vm5  ;;  %v791_v35 = vor.u32 1.1754944e-38, %v790_v5  ;;  %v806_v5 = vor.u32 1.1754944e-38, %v805_v31  ;;  %v3066_v31 = vld [vmem:[#allocation42_spill] sm:$0xff] }
 0x2c7   :  { %v781_v32 = vsub.f32 1.0, %v780_v4 }
 0x2c8   :  { %v767_v29 = vmul.f32 %v1666_v2, %v766_v56 }
 0x2c9   :  { %v782_v8 = vmul.f32 %v1668_v39, %v781_v32 }
 0x2ca   :  { %v1670_v22 = vpop.eup %1669  ;;  %v768_v21 = vadd.f32 %v1666_v2, %v767_v29 }
 0x2cb   :  { %v795_v24 = vmul.f32 %v1670_v22, %v763_v47  ;;  %v783_v3 = vadd.f32 %v1668_v39, %v782_v8  ;;  %v1672_v43 = vpop.eup %1671  ;;  %vm800_vm12 = vweird.f32 %v1670_v22 }
 0x2cc   :  { %v772_v4 = vsel %vm771_vm8, %v1666_v2, %v768_v21  ;;  %v803_v21 = vand.u32 2147483647, %v763_v47  ;;  %vm801_vm14 = vmor %vm799_vm13, %vm800_vm12  ;;  %v3055_v47 = vld [vmem:[#allocation19_spill] sm:$0xff] }
 0x2cd   :  { %v796_v20 = vsub.f32 1.0, %v795_v24  ;;  %v777_v56 = vsel %vm774_vm10, %v776_v25, %v772_v4  ;;  %v787_v18 = vsel %vm786_vm9, %v1668_v39, %v783_v3  ;;  %v3056_v24 = vld [vmem:[#allocation20_spill] sm:$0xff]  ;;  %v3057_v25 = vld [vmem:[#allocation21_spill] sm:$0xff]  ;;  %v3058_v3 = vld [vmem:[#allocation34_spill] sm:$0xff] }
 0x2ce   :  { %v792_v32 = vsel %vm789_vm11, %v791_v35, %v787_v18  ;;  %v811_v16 = vmul.f32 %v1672_v43, %v777_v56  ;;  %vm804_vm15 = vcmp.eq.f32.partialorder %v803_v21, 8.507059e+37  ;;  %v3059_v35 = vld [vmem:[#allocation22_spill] sm:$0xff]  ;;  %v3060_v4 = vld [vmem:[#allocation23_spill] sm:$0xff]  ;;  %v3061_v43 = vld [vmem:[#allocation24_spill] sm:$0xff] }
 0x2cf   :  { %v797_v15 = vmul.f32 %v1670_v22, %v796_v20  ;;  %v810_v29 = vmul.f32 %v792_v32, %v2519_v28  ;;  %v3062_v56 = vld [vmem:[#allocation38_spill] sm:$0xff]  ;;  %v3063_v32 = vld [vmem:[#allocation25_spill] sm:$0xff]  ;;  %v3067_v21 = vld [vmem:[#allocation28_spill] sm:$0xff] }
 0x2d1   :  { %v2691_v27 = vadd.f32 %v811_v16, %v810_v29  ;;  %v798_v26 = vadd.f32 %v1670_v22, %v797_v15  ;;  %v3064_v29 = vld [vmem:[#allocation26_spill] sm:$0xff] }
 0x2d3   :  { %1673 = vtanh.f32 %v2691_v27  ;;  %v802_v2 = vsel %vm801_vm14, %v1670_v22, %v798_v26  ;;  %v3065_v26 = vld [vmem:[#allocation27_spill] sm:$0xff] }
 0x2d4   :  { %v807_v30 = vsel %vm804_vm15, %v806_v5, %v802_v2  ;;  %v3068_v2 = vld [vmem:[#allocation29_spill] sm:$0xff]  ;;  %v3069_v5 = vld [vmem:[#allocation30_spill] sm:$0xff] }
 0x2d9   :  { %v1674_v39 = vpop.eup %1673 }
 0x2da   :  { %v814_v18 = vmul.f32 %v1674_v39, %v807_v30  ;;  %v3070_v39 = vld [vmem:[#allocation43_spill] sm:$0xff] }
 0x2db   :  { %v3071_v30 = vld [vmem:[#allocation31_spill] sm:$0xff] }
 0x2dc   :  { %v816_v8 = vrot.slane %v814_v18, 1  ;;  %v817_v20 = vrot.slane %v814_v18, 2  ;;  %v818_v10 = vrot.slane %v814_v18, 3  ;;  %830 = vst [vmem:[#allocation10 + $0x3] sm:$0x1] %v814_v18  ;;  %859 = vmatmul.f32.vlgmr.msra.gmra.mxu0 %v814_v18  ;;  %879 = vmatmul.f32.vlgmr.msra.gmra.mxu1 %v814_v18  ;;  %v819_v28 = vrot.slane %v814_v18, 4 }
 0x2dd   :  { %899 = vmatmul.f32.vlgmr.msra.gmra.mxu2 %v814_v18  ;;  %919 = vmatmul.f32.vlgmr.msra.gmra.mxu3 %v814_v18  ;;  %v820_v15 = vrot.slane %v814_v18, 5  ;;  %v821_v16 = vrot.slane %v814_v18, 6  ;;  %v822_v22 = vrot.slane %v814_v18, 7  ;;  %v3072_v18 = vld [vmem:[#allocation32_spill] sm:$0xff] }
 0x2de   :  { %831 = vst [vmem:[#allocation10 + $0xb] sm:$0x1] %v816_v8  ;;  %1185 = vmatpush.msra.mxu0 %v2522_v6  ;;  %1205 = vmatpush.msra.mxu1 %v2525_v7  ;;  %v3073_v8 = vld [vmem:[#allocation33_spill] sm:$0xff] }
 0x2df   :  { %832 = vst [vmem:[#allocation10 + $0x13] sm:$0x1] %v817_v20  ;;  %1225 = vmatpush.msra.mxu2 %v2432_v52  ;;  %1245 = vmatpush.msra.mxu3 %v2529_v9  ;;  %v3074_v20 = vld [vmem:[#allocation44_spill] sm:$0xff] }
 0x2e0   :  { %833 = vst [vmem:[#allocation10 + $0x1b] sm:$0x1] %v818_v10  ;;  %1186 = vmatpush.msra.mxu0 %v2436_v46  ;;  %1206 = vmatpush.msra.mxu1 %v2439_v54  ;;  %v3075_v10 = vld [vmem:[#allocation35_spill] sm:$0xff] }
 0x2e1   :  { %834 = vst [vmem:[#allocation10 + $0x23] sm:$0x1] %v819_v28  ;;  %1226 = vmatpush.msra.mxu2 %v2442_v1  ;;  %1246 = vmatpush.msra.mxu3 %v2535_v11  ;;  %v3076_v28 = vld [vmem:[#allocation36_spill] sm:$0xff] }
 0x2e2   :  { %835 = vst [vmem:[#allocation10 + $0x2b] sm:$0x1] %v820_v15  ;;  %1187 = vmatpush.msra.mxu0 %v2446_v59  ;;  %1207 = vmatpush.msra.mxu1 %v2449_v17  ;;  %v3077_v15 = vld [vmem:[#allocation37_spill] sm:$0xff] }
 0x2e3   :  { %836 = vst [vmem:[#allocation10 + $0x33] sm:$0x1] %v821_v16  ;;  %1227 = vmatpush.msra.mxu2 %v2452_v55  ;;  %1247 = vmatpush.msra.mxu3 %v2541_v12  ;;  %v3078_v16 = vld [vmem:[#allocation45_spill] sm:$0xff] }
 0x2e4   :  { %837 = vst [vmem:[#allocation10 + $0x3b] sm:$0x1] %v822_v22  ;;  %1188 = vmatpush.msra.mxu0 %v2456_v36  ;;  %1208 = vmatpush.msra.mxu1 %v2459_v19  ;;  %v3079_v22 = vld [vmem:[#allocation39_spill] sm:$0xff] }
 0x2e5   :  { %1228 = vmatpush.msra.mxu2 %v2462_v37  ;;  %1248 = vmatpush.msra.mxu3 %v2547_v13 }
 0x2e6   :  { %1189 = vmatpush.msra.mxu0 %v2466_v38  ;;  %1209 = vmatpush.msra.mxu1 %v2469_v23 }
 0x2e7   :  { %1229 = vmatpush.msra.mxu2 %v2552_v49  ;;  %1249 = vmatpush.msra.mxu3 %v2555_v48 }
 0x2e8   :  { %1190 = vmatpush.msra.mxu0 %v2558_v34  ;;  %1210 = vmatpush.msra.mxu1 %v2561_v45 }
 0x2e9   :  { %1230 = vmatpush.msra.mxu2 %v2564_v57  ;;  %1250 = vmatpush.msra.mxu3 %v2567_v51 }
 0x2ea   :  { %1191 = vmatpush.msra.mxu0 %v2570_v50  ;;  %1211 = vmatpush.msra.mxu1 %v2573_v58 }
 0x2eb   :  { %1231 = vmatpush.msra.mxu2 %v2576_v33  ;;  %1251 = vmatpush.msra.mxu3 %v2579_v41 }
 0x2ec   :  { %1192 = vmatpush.msra.mxu0 %v2582_v44  ;;  %1212 = vmatpush.msra.mxu1 %v2585_v0 }
 0x2ed   :  { %1232 = vmatpush.msra.mxu2 %v2588_v63  ;;  %1252 = vmatpush.msra.mxu3 %v2591_v42 }
 0x2ee   :  { %1193 = vmatpush.msra.mxu0 %v2594_v40  ;;  %1213 = vmatpush.msra.mxu1 %v2597_v60 }
 0x2ef   :  { %1233 = vmatpush.msra.mxu2 %v2600_v61  ;;  %1253 = vmatpush.msra.mxu3 %v2603_v62 }
 0x2f0   :  { %1194 = vmatpush.msra.mxu0 %v2606_v53  ;;  %1214 = vmatpush.msra.mxu1 %v2609_v14 }
 0x2f1   :  { %1234 = vmatpush.msra.mxu2 %v3055_v47  ;;  %1254 = vmatpush.msra.mxu3 %v3056_v24 }
 0x2f2   :  { %1195 = vmatpush.msra.mxu0 %v3057_v25  ;;  %1215 = vmatpush.msra.mxu1 %v3058_v3 }
 0x2f3   :  { %1235 = vmatpush.msra.mxu2 %v3059_v35  ;;  %1255 = vmatpush.msra.mxu3 %v3060_v4 }
 0x2f4   :  { %1196 = vmatpush.msra.mxu0 %v3061_v43  ;;  %1216 = vmatpush.msra.mxu1 %v3062_v56 }
 0x2f5   :  { %1236 = vmatpush.msra.mxu2 %v3063_v32  ;;  %1256 = vmatpush.msra.mxu3 %v3064_v29 }
 0x2f6   :  { %1197 = vmatpush.msra.mxu0 %v3065_v26  ;;  %1217 = vmatpush.msra.mxu1 %v3066_v31 }
 0x2f7   :  { %1237 = vmatpush.msra.mxu2 %v3067_v21  ;;  %1257 = vmatpush.msra.mxu3 %v3068_v2 }
 0x2f8   :  { %1198 = vmatpush.msra.mxu0 %v3069_v5  ;;  %1218 = vmatpush.msra.mxu1 %v3070_v39  ;;  %v3080_v5 = vld [vmem:[#allocation40_spill] sm:$0xff]  ;;  %v839_v39 = vld [vmem:[#allocation2 + $0x80] sm:$0xff] }
 0x2f9   :  { %1238 = vmatpush.msra.mxu2 %v3071_v30  ;;  %1258 = vmatpush.msra.mxu3 %v3072_v18  ;;  %v840_v30 = vld [vmem:[#allocation2 + $0x88] sm:$0xff] }
 0x2fa   :  { %1199 = vmatpush.msra.mxu0 %v3073_v8  ;;  %1219 = vmatpush.msra.mxu1 %v3074_v20 }
 0x2fb   :  { %1239 = vmatpush.msra.mxu2 %v3075_v10  ;;  %1259 = vmatpush.msra.mxu3 %v3076_v28  ;;  %v841_v10 = vld [vmem:[#allocation2 + $0x90] sm:$0xff] }
 0x2fc   :  { %1200 = vmatpush.msra.mxu0 %v3077_v15  ;;  %1220 = vmatpush.msra.mxu1 %v3078_v16 }
 0x2fd   :  { %1240 = vmatpush.msra.mxu2 %v3079_v22  ;;  %1260 = vmatpush.msra.mxu3 %v3080_v5  ;;  %v842_v5 = vld [vmem:[#allocation2 + $0x98] sm:$0xff] }
 0x359   :  { %v860_v2 = vpop.f32.mrf.mxu0  ;;  %v880_v18 = vpop.f32.mrf.mxu1 }
 0x35a   :  { %v861_v21 = vadd.f32 %v860_v2, %v839_v39  ;;  %v881_v8 = vadd.f32 %v880_v18, %v840_v30 }
 0x35c   :  { %v1588_v31 = vmul.f32 -1.442695, %v861_v21  ;;  %v1589_v20 = vmul.f32 -1.442695, %v881_v8 }
 0x35e   :  { %1675 = vpow2.f32 %v1588_v31 }
 0x35f   :  { %1677 = vpow2.f32 %v1589_v20 }
 0x360   :  { %v900_v28 = vpop.f32.mrf.mxu2  ;;  %v920_v56 = vpop.f32.mrf.mxu3 }
 0x361   :  { %v901_v26 = vadd.f32 %v900_v28, %v841_v10  ;;  %v921_v21 = vadd.f32 %v920_v56, %v842_v5 }
 0x363   :  { %v1590_v15 = vmul.f32 -1.442695, %v901_v26 }
 0x364   :  { %v1676_v29 = vpop.eup %1675 }
 0x365   :  { %v1678_v16 = vpop.eup %1677  ;;  %v932_v32 = vadd.f32 1.0, %v1676_v29  ;;  %1679 = vpow2.f32 %v1590_v15 }
 0x366   :  { %v933_v22 = vadd.f32 1.0, %v1678_v16 }
 0x367   :  { %1681 = vrcp.f32 %v932_v32  ;;  %v946_v26 = vand.u32 2147483648, %v932_v32  ;;  %v944_v28 = vand.u32 2147483647, %v932_v32  ;;  %vm940_vm2 = vweird.f32 %v932_v32 }
 0x368   :  { %1683 = vrcp.f32 %v933_v22  ;;  %v961_v10 = vand.u32 2147483648, %v933_v22  ;;  %v959_v16 = vand.u32 2147483647, %v933_v22  ;;  %vm955_vm3 = vweird.f32 %v933_v22 }
 0x369   :  { %v947_v56 = vor.u32 1.1754944e-38, %v946_v26  ;;  %vm945_vm6 = vcmp.eq.f32.partialorder %v944_v28, 8.507059e+37 }
 0x36a   :  { %vm960_vm7 = vcmp.eq.f32.partialorder %v959_v16, 8.507059e+37 }
 0x36b   :  { %v1680_v43 = vpop.eup %1679 }
 0x36c   :  { %v934_v2 = vadd.f32 1.0, %v1680_v43 }
 0x36d   :  { %v1682_v39 = vpop.eup %1681 }
 0x36e   :  { %v1684_v30 = vpop.eup %1683  ;;  %v936_v31 = vmul.f32 %v1682_v39, %v932_v32  ;;  %1685 = vrcp.f32 %v934_v2  ;;  %vm941_vm0 = vweird.f32 %v1682_v39  ;;  %v976_v26 = vand.u32 2147483648, %v934_v2 }
 0x36f   :  { %v951_v18 = vmul.f32 %v1684_v30, %v933_v22  ;;  %1687 = vtanh.f32 %v921_v21  ;;  %vm956_vm1 = vweird.f32 %v1684_v30  ;;  %vm942_vm4 = vmor %vm940_vm2, %vm941_vm0  ;;  %vm970_vm9 = vweird.f32 %v934_v2 }
 0x370   :  { %v937_v8 = vsub.f32 1.0, %v936_v31  ;;  %vm957_vm5 = vmor %vm955_vm3, %vm956_vm1  ;;  %v962_v31 = vor.u32 1.1754944e-38, %v961_v10  ;;  %v977_v10 = vor.u32 1.1754944e-38, %v976_v26 }
 0x371   :  { %v952_v20 = vsub.f32 1.0, %v951_v18 }
 0x372   :  { %v938_v29 = vmul.f32 %v1682_v39, %v937_v8 }
 0x373   :  { %v953_v15 = vmul.f32 %v1684_v30, %v952_v20 }
 0x374   :  { %v1686_v4 = vpop.eup %1685  ;;  %v939_v35 = vadd.f32 %v1682_v39, %v938_v29 }
 0x375   :  { %v966_v43 = vmul.f32 %v1686_v4, %v934_v2  ;;  %v954_v5 = vadd.f32 %v1684_v30, %v953_v15  ;;  %v1688_v21 = vpop.eup %1687  ;;  %vm971_vm8 = vweird.f32 %v1686_v4 }
 0x376   :  { %v943_v18 = vsel %vm942_vm4, %v1682_v39, %v939_v35  ;;  %v974_v35 = vand.u32 2147483647, %v934_v2  ;;  %vm972_vm10 = vmor %vm970_vm9, %vm971_vm8 }
 0x377   :  { %v967_v3 = vsub.f32 1.0, %v966_v43  ;;  %v948_v8 = vsel %vm945_vm6, %v947_v56, %v943_v18  ;;  %v958_v25 = vsel %vm957_vm5, %v1684_v30, %v954_v5 }
 0x378   :  { %v963_v20 = vsel %vm960_vm7, %v962_v31, %v958_v25  ;;  %v982_v24 = vmul.f32 %v1688_v21, %v948_v8  ;;  %vm975_vm11 = vcmp.eq.f32.partialorder %v974_v35, 8.507059e+37  ;;  %v1013_v31 = vld [vmem:[#allocation2 + $0xb8] sm:$0xff] }
 0x379   :  { %v968_v47 = vmul.f32 %v1686_v4, %v967_v3  ;;  %v981_v29 = vmul.f32 %v963_v20, %v2691_v27 }
 0x37b   :  { %v2759_v32 = vadd.f32 %v982_v24, %v981_v29  ;;  %v969_v22 = vadd.f32 %v1686_v4, %v968_v47 }
 0x37d   :  { %1689 = vtanh.f32 %v2759_v32  ;;  %v973_v39 = vsel %vm972_vm10, %v1686_v4, %v969_v22 }
 0x37e   :  { %v978_v28 = vsel %vm975_vm11, %v977_v10, %v973_v39 }
 0x383   :  { %v1690_v30 = vpop.eup %1689 }
 0x384   :  { %v985_v25 = vmul.f32 %v1690_v30, %v978_v28 }
 0x386   :  { %v987_v15 = vrot.slane %v985_v25, 1  ;;  %v988_v3 = vrot.slane %v985_v25, 2  ;;  %v989_v16 = vrot.slane %v985_v25, 3  ;;  %1001 = vst [vmem:[#allocation10 + $0x4] sm:$0x1] %v985_v25  ;;  %1030 = vmatmul.f32.vlgmr.msrb.gmra.mxu0 %v985_v25  ;;  %1050 = vmatmul.f32.vlgmr.msrb.gmra.mxu1 %v985_v25  ;;  %v990_v27 = vrot.slane %v985_v25, 4 }
 0x387   :  { %1070 = vmatmul.f32.vlgmr.msrb.gmra.mxu2 %v985_v25  ;;  %1090 = vmatmul.f32.vlgmr.msrb.gmra.mxu3 %v985_v25  ;;  %v991_v47 = vrot.slane %v985_v25, 5  ;;  %v992_v24 = vrot.slane %v985_v25, 6  ;;  %v993_v4 = vrot.slane %v985_v25, 7 }
 0x388   :  { %1002 = vst [vmem:[#allocation10 + $0xc] sm:$0x1] %v987_v15  ;;  %1356 = vmatpush.msrb.mxu0 %v2522_v6  ;;  %1376 = vmatpush.msrb.mxu1 %v2525_v7  ;;  %v3093_v6 = vld [vmem:[#allocation28_spill] sm:$0xff]  ;;  %v3094_v7 = vld [vmem:[#allocation29_spill] sm:$0xff] }
 0x389   :  { %1003 = vst [vmem:[#allocation10 + $0x14] sm:$0x1] %v988_v3  ;;  %1396 = vmatpush.msrb.mxu2 %v2432_v52  ;;  %1416 = vmatpush.msrb.mxu3 %v2529_v9  ;;  %v3081_v52 = vld [vmem:[#allocation19_spill] sm:$0xff]  ;;  %v3095_v9 = vld [vmem:[#allocation30_spill] sm:$0xff] }
 0x38a   :  { %1004 = vst [vmem:[#allocation10 + $0x1c] sm:$0x1] %v989_v16  ;;  %1357 = vmatpush.msrb.mxu0 %v2436_v46  ;;  %1377 = vmatpush.msrb.mxu1 %v2439_v54  ;;  %v3082_v46 = vld [vmem:[#allocation20_spill] sm:$0xff]  ;;  %v3083_v54 = vld [vmem:[#allocation21_spill] sm:$0xff] }
 0x38b   :  { %1005 = vst [vmem:[#allocation10 + $0x24] sm:$0x1] %v990_v27  ;;  %1397 = vmatpush.msrb.mxu2 %v2442_v1  ;;  %1417 = vmatpush.msrb.mxu3 %v2535_v11  ;;  %v3084_v1 = vld [vmem:[#allocation34_spill] sm:$0xff]  ;;  %v3096_v11 = vld [vmem:[#allocation43_spill] sm:$0xff] }
 0x38c   :  { %1006 = vst [vmem:[#allocation10 + $0x2c] sm:$0x1] %v991_v47  ;;  %1358 = vmatpush.msrb.mxu0 %v2446_v59  ;;  %1378 = vmatpush.msrb.mxu1 %v2449_v17  ;;  %v3085_v59 = vld [vmem:[#allocation22_spill] sm:$0xff]  ;;  %v3086_v17 = vld [vmem:[#allocation23_spill] sm:$0xff] }
 0x38d   :  { %1007 = vst [vmem:[#allocation10 + $0x34] sm:$0x1] %v992_v24  ;;  %1398 = vmatpush.msrb.mxu2 %v2452_v55  ;;  %1418 = vmatpush.msrb.mxu3 %v2541_v12  ;;  %v3087_v55 = vld [vmem:[#allocation24_spill] sm:$0xff]  ;;  %v3097_v12 = vld [vmem:[#allocation31_spill] sm:$0xff] }
 0x38e   :  { %1008 = vst [vmem:[#allocation10 + $0x3c] sm:$0x1] %v993_v4  ;;  %1359 = vmatpush.msrb.mxu0 %v2456_v36  ;;  %1379 = vmatpush.msrb.mxu1 %v2459_v19  ;;  %v3088_v36 = vld [vmem:[#allocation38_spill] sm:$0xff]  ;;  %v3089_v19 = vld [vmem:[#allocation25_spill] sm:$0xff] }
 0x38f   :  { %1399 = vmatpush.msrb.mxu2 %v2462_v37  ;;  %1419 = vmatpush.msrb.mxu3 %v2547_v13  ;;  %v3090_v37 = vld [vmem:[#allocation26_spill] sm:$0xff]  ;;  %v3098_v13 = vld [vmem:[#allocation32_spill] sm:$0xff] }
 0x390   :  { %1360 = vmatpush.msrb.mxu0 %v2466_v38  ;;  %1380 = vmatpush.msrb.mxu1 %v2469_v23  ;;  %v3091_v38 = vld [vmem:[#allocation27_spill] sm:$0xff]  ;;  %v3092_v23 = vld [vmem:[#allocation42_spill] sm:$0xff] }
 0x391   :  { %1400 = vmatpush.msrb.mxu2 %v2552_v49  ;;  %1420 = vmatpush.msrb.mxu3 %v2555_v48  ;;  %v3099_v49 = vld [vmem:[#allocation33_spill] sm:$0xff]  ;;  %v3100_v48 = vld [vmem:[#allocation44_spill] sm:$0xff] }
 0x392   :  { %1361 = vmatpush.msrb.mxu0 %v2558_v34  ;;  %1381 = vmatpush.msrb.mxu1 %v2561_v45  ;;  %v3101_v34 = vld [vmem:[#allocation35_spill] sm:$0xff]  ;;  %v3102_v45 = vld [vmem:[#allocation36_spill] sm:$0xff] }
 0x393   :  { %1401 = vmatpush.msrb.mxu2 %v2564_v57  ;;  %1421 = vmatpush.msrb.mxu3 %v2567_v51  ;;  %v3103_v57 = vld [vmem:[#allocation37_spill] sm:$0xff] }
 0x394   :  { %1362 = vmatpush.msrb.mxu0 %v2570_v50  ;;  %1382 = vmatpush.msrb.mxu1 %v2573_v58  ;;  %v3104_v51 = vld [vmem:[#allocation45_spill] sm:$0xff]  ;;  %v3105_v50 = vld [vmem:[#allocation39_spill] sm:$0xff]  ;;  %v3106_v58 = vld [vmem:[#allocation40_spill] sm:$0xff] }
 0x395   :  { %1402 = vmatpush.msrb.mxu2 %v2576_v33  ;;  %1422 = vmatpush.msrb.mxu3 %v2579_v41  ;;  %v1010_v33 = vld [vmem:[#allocation2 + $0xa0] sm:$0xff]  ;;  %v1011_v41 = vld [vmem:[#allocation2 + $0xa8] sm:$0xff] }
 0x396   :  { %1363 = vmatpush.msrb.mxu0 %v2582_v44  ;;  %1383 = vmatpush.msrb.mxu1 %v2585_v0 }
 0x397   :  { %1403 = vmatpush.msrb.mxu2 %v2588_v63  ;;  %1423 = vmatpush.msrb.mxu3 %v2591_v42 }
 0x398   :  { %1364 = vmatpush.msrb.mxu0 %v2594_v40  ;;  %1384 = vmatpush.msrb.mxu1 %v2597_v60 }
 0x399   :  { %1404 = vmatpush.msrb.mxu2 %v2600_v61  ;;  %1424 = vmatpush.msrb.mxu3 %v2603_v62  ;;  %v1012_v61 = vld [vmem:[#allocation2 + $0xb0] sm:$0xff] }
 0x39a   :  { %1365 = vmatpush.msrb.mxu0 %v2606_v53  ;;  %1385 = vmatpush.msrb.mxu1 %v2609_v14 }
 0x39b   :  { %1405 = vmatpush.msrb.mxu2 %v3081_v52  ;;  %1425 = vmatpush.msrb.mxu3 %v3082_v46 }
 0x39c   :  { %1366 = vmatpush.msrb.mxu0 %v3083_v54  ;;  %1386 = vmatpush.msrb.mxu1 %v3084_v1 }
 0x39d   :  { %1406 = vmatpush.msrb.mxu2 %v3085_v59  ;;  %1426 = vmatpush.msrb.mxu3 %v3086_v17 }
 0x39e   :  { %1367 = vmatpush.msrb.mxu0 %v3087_v55  ;;  %1387 = vmatpush.msrb.mxu1 %v3088_v36 }
 0x39f   :  { %1407 = vmatpush.msrb.mxu2 %v3089_v19  ;;  %1427 = vmatpush.msrb.mxu3 %v3090_v37 }
 0x3a0   :  { %1368 = vmatpush.msrb.mxu0 %v3091_v38  ;;  %1388 = vmatpush.msrb.mxu1 %v3092_v23 }
 0x3a1   :  { %1408 = vmatpush.msrb.mxu2 %v3093_v6  ;;  %1428 = vmatpush.msrb.mxu3 %v3094_v7 }
 0x3a2   :  { %1369 = vmatpush.msrb.mxu0 %v3095_v9  ;;  %1389 = vmatpush.msrb.mxu1 %v3096_v11 }
 0x3a3   :  { %1409 = vmatpush.msrb.mxu2 %v3097_v12  ;;  %1429 = vmatpush.msrb.mxu3 %v3098_v13 }
 0x3a4   :  { %1370 = vmatpush.msrb.mxu0 %v3099_v49  ;;  %1390 = vmatpush.msrb.mxu1 %v3100_v48 }
 0x3a5   :  { %1410 = vmatpush.msrb.mxu2 %v3101_v34  ;;  %1430 = vmatpush.msrb.mxu3 %v3102_v45 }
 0x3a6   :  { %1371 = vmatpush.msrb.mxu0 %v3103_v57  ;;  %1391 = vmatpush.msrb.mxu1 %v3104_v51 }
 0x3a7   :  { %1411 = vmatpush.msrb.mxu2 %v3105_v50  ;;  %1431 = vmatpush.msrb.mxu3 %v3106_v58 }
 0x403   :  { %v1031_v44 = vpop.f32.mrf.mxu0  ;;  %v1051_v0 = vpop.f32.mrf.mxu1 }
 0x404   :  { %v1032_v63 = vadd.f32 %v1031_v44, %v1010_v33  ;;  %v1052_v42 = vadd.f32 %v1051_v0, %v1011_v41  ;;  %v1181_v33 = vld [vmem:[#allocation2 + $0xc0] sm:$0xff]  ;;  %v1182_v41 = vld [vmem:[#allocation2 + $0xc8] sm:$0xff] }
 0x406   :  { %v1591_v40 = vmul.f32 -1.442695, %v1032_v63  ;;  %v1592_v60 = vmul.f32 -1.442695, %v1052_v42 }
 0x408   :  { %1691 = vpow2.f32 %v1591_v40 }
 0x409   :  { %1693 = vpow2.f32 %v1592_v60 }
 0x40a   :  { %v1071_v62 = vpop.f32.mrf.mxu2  ;;  %v1091_v18 = vpop.f32.mrf.mxu3 }
 0x40b   :  { %v1072_v53 = vadd.f32 %v1071_v62, %v1012_v61  ;;  %v1092_v29 = vadd.f32 %v1091_v18, %v1013_v31  ;;  %v1183_v61 = vld [vmem:[#allocation2 + $0xd0] sm:$0xff]  ;;  %v1184_v31 = vld [vmem:[#allocation2 + $0xd8] sm:$0xff] }
 0x40d   :  { %v1593_v14 = vmul.f32 -1.442695, %v1072_v53 }
 0x40e   :  { %v1692_v2 = vpop.eup %1691 }
 0x40f   :  { %v1694_v43 = vpop.eup %1693  ;;  %v1103_v56 = vadd.f32 1.0, %v1692_v2  ;;  %1695 = vpow2.f32 %v1593_v14 }
 0x410   :  { %v1104_v5 = vadd.f32 1.0, %v1694_v43 }
 0x411   :  { %1697 = vrcp.f32 %v1103_v56  ;;  %v1117_v30 = vand.u32 2147483648, %v1103_v56  ;;  %v1115_v15 = vand.u32 2147483647, %v1103_v56  ;;  %vm1111_vm14 = vweird.f32 %v1103_v56 }
 0x412   :  { %1699 = vrcp.f32 %v1104_v5  ;;  %v1132_v28 = vand.u32 2147483648, %v1104_v5  ;;  %v1130_v16 = vand.u32 2147483647, %v1104_v5  ;;  %vm1126_vm15 = vweird.f32 %v1104_v5 }
 0x413   :  { %v1118_v4 = vor.u32 1.1754944e-38, %v1117_v30  ;;  %vm1116_vm2 = vcmp.eq.f32.partialorder %v1115_v15, 8.507059e+37 }
 0x414   :  { %v1133_v46 = vor.u32 1.1754944e-38, %v1132_v28  ;;  %vm1131_vm3 = vcmp.eq.f32.partialorder %v1130_v16, 8.507059e+37 }
 0x415   :  { %v1696_v21 = vpop.eup %1695 }
 0x416   :  { %v1105_v8 = vadd.f32 1.0, %v1696_v21 }
 0x417   :  { %v1698_v20 = vpop.eup %1697 }
 0x418   :  { %v1700_v22 = vpop.eup %1699  ;;  %v1107_v26 = vmul.f32 %v1698_v20, %v1103_v56  ;;  %1701 = vrcp.f32 %v1105_v8  ;;  %vm1112_vm12 = vweird.f32 %v1698_v20  ;;  %v1147_v7 = vand.u32 2147483648, %v1105_v8 }
 0x419   :  { %v1122_v35 = vmul.f32 %v1700_v22, %v1104_v5  ;;  %1703 = vtanh.f32 %v1092_v29  ;;  %vm1127_vm13 = vweird.f32 %v1700_v22  ;;  %vm1113_vm0 = vmor %vm1111_vm14, %vm1112_vm12  ;;  %vm1141_vm5 = vweird.f32 %v1105_v8 }
 0x41a   :  { %v1108_v39 = vsub.f32 1.0, %v1107_v26  ;;  %vm1128_vm1 = vmor %vm1126_vm15, %vm1127_vm13  ;;  %v1145_v9 = vand.u32 2147483647, %v1105_v8  ;;  %v1148_v12 = vor.u32 1.1754944e-38, %v1147_v7 }
 0x41b   :  { %v1123_v10 = vsub.f32 1.0, %v1122_v35 }
 0x41c   :  { %v1109_v25 = vmul.f32 %v1698_v20, %v1108_v39  ;;  %vm1146_vm7 = vcmp.eq.f32.partialorder %v1145_v9, 8.507059e+37 }
 0x41d   :  { %v1124_v3 = vmul.f32 %v1700_v22, %v1123_v10 }
 0x41e   :  { %v1702_v27 = vpop.eup %1701  ;;  %v1110_v47 = vadd.f32 %v1698_v20, %v1109_v25 }
 0x41f   :  { %v1137_v24 = vmul.f32 %v1702_v27, %v1105_v8  ;;  %v1125_v52 = vadd.f32 %v1700_v22, %v1124_v3  ;;  %v1704_v1 = vpop.eup %1703  ;;  %vm1142_vm4 = vweird.f32 %v1702_v27 }
 0x420   :  { %v1114_v54 = vsel %vm1113_vm0, %v1698_v20, %v1110_v47  ;;  %vm1143_vm6 = vmor %vm1141_vm5, %vm1142_vm4 }
 0x421   :  { %v1138_v59 = vsub.f32 1.0, %v1137_v24  ;;  %v1119_v17 = vsel %vm1116_vm2, %v1118_v4, %v1114_v54  ;;  %v1129_v55 = vsel %vm1128_vm1, %v1700_v22, %v1125_v52 }
 0x422   :  { %v1134_v36 = vsel %vm1131_vm3, %v1133_v46, %v1129_v55  ;;  %v1153_v19 = vmul.f32 %v1704_v1, %v1119_v17 }
 0x423   :  { %v1139_v37 = vmul.f32 %v1702_v27, %v1138_v59  ;;  %v1152_v38 = vmul.f32 %v1134_v36, %v2759_v32 }
 0x425   :  { %v2827_v23 = vadd.f32 %v1153_v19, %v1152_v38  ;;  %v1140_v6 = vadd.f32 %v1702_v27, %v1139_v37 }
 0x427   :  { %1705 = vtanh.f32 %v2827_v23  ;;  %v1144_v11 = vsel %vm1143_vm6, %v1702_v27, %v1140_v6 }
 0x428   :  { %v1149_v49 = vsel %vm1146_vm7, %v1148_v12, %v1144_v11 }
 0x42d   :  { %v1706_v13 = vpop.eup %1705 }
 0x42e   :  { %v1156_v48 = vmul.f32 %v1706_v13, %v1149_v49 }
 0x430   :  { %v1158_v34 = vrot.slane %v1156_v48, 1  ;;  %v1159_v45 = vrot.slane %v1156_v48, 2  ;;  %v1160_v57 = vrot.slane %v1156_v48, 3  ;;  %1172 = vst [vmem:[#allocation10 + $0x5] sm:$0x1] %v1156_v48  ;;  %1201 = vmatmul.f32.vlgmr.msra.gmra.mxu0 %v1156_v48  ;;  %1221 = vmatmul.f32.vlgmr.msra.gmra.mxu1 %v1156_v48  ;;  %v1161_v32 = vrot.slane %v1156_v48, 4 }
 0x431   :  { %1241 = vmatmul.f32.vlgmr.msra.gmra.mxu2 %v1156_v48  ;;  %1261 = vmatmul.f32.vlgmr.msra.gmra.mxu3 %v1156_v48  ;;  %v1162_v51 = vrot.slane %v1156_v48, 5  ;;  %v1163_v50 = vrot.slane %v1156_v48, 6  ;;  %v1164_v58 = vrot.slane %v1156_v48, 7 }
 0x432   :  { %1173 = vst [vmem:[#allocation10 + $0xd] sm:$0x1] %v1158_v34 }
 0x433   :  { %1174 = vst [vmem:[#allocation10 + $0x15] sm:$0x1] %v1159_v45 }
 0x434   :  { %1175 = vst [vmem:[#allocation10 + $0x1d] sm:$0x1] %v1160_v57 }
 0x435   :  { %1176 = vst [vmem:[#allocation10 + $0x25] sm:$0x1] %v1161_v32 }
 0x436   :  { %1177 = vst [vmem:[#allocation10 + $0x2d] sm:$0x1] %v1162_v51 }
 0x437   :  { %1178 = vst [vmem:[#allocation10 + $0x35] sm:$0x1] %v1163_v50 }
 0x438   :  { %1179 = vst [vmem:[#allocation10 + $0x3d] sm:$0x1] %v1164_v58 }
 0x4ad   :  { %v1202_v44 = vpop.f32.mrf.mxu0  ;;  %v1222_v0 = vpop.f32.mrf.mxu1 }
 0x4ae   :  { %v1203_v63 = vadd.f32 %v1202_v44, %v1181_v33  ;;  %v1223_v42 = vadd.f32 %v1222_v0, %v1182_v41  ;;  %v1352_v33 = vld [vmem:[#allocation2 + $0xe0] sm:$0xff]  ;;  %v1353_v41 = vld [vmem:[#allocation2 + $0xe8] sm:$0xff] }
 0x4b0   :  { %v1594_v40 = vmul.f32 -1.442695, %v1203_v63  ;;  %v1595_v60 = vmul.f32 -1.442695, %v1223_v42 }
 0x4b2   :  { %1707 = vpow2.f32 %v1594_v40 }
 0x4b3   :  { %1709 = vpow2.f32 %v1595_v60 }
 0x4b4   :  { %v1242_v62 = vpop.f32.mrf.mxu2  ;;  %v1262_v18 = vpop.f32.mrf.mxu3 }
 0x4b5   :  { %v1243_v53 = vadd.f32 %v1242_v62, %v1183_v61  ;;  %v1263_v29 = vadd.f32 %v1262_v18, %v1184_v31  ;;  %v1354_v61 = vld [vmem:[#allocation2 + $0xf0] sm:$0xff]  ;;  %v1355_v31 = vld [vmem:[#allocation2 + $0xf8] sm:$0xff] }
 0x4b7   :  { %v1596_v14 = vmul.f32 -1.442695, %v1243_v53 }
 0x4b8   :  { %v1708_v2 = vpop.eup %1707 }
 0x4b9   :  { %v1710_v43 = vpop.eup %1709  ;;  %v1274_v56 = vadd.f32 1.0, %v1708_v2  ;;  %1711 = vpow2.f32 %v1596_v14 }
 0x4ba   :  { %v1275_v5 = vadd.f32 1.0, %v1710_v43 }
 0x4bb   :  { %1713 = vrcp.f32 %v1274_v56  ;;  %v1288_v30 = vand.u32 2147483648, %v1274_v56  ;;  %v1286_v15 = vand.u32 2147483647, %v1274_v56  ;;  %vm1282_vm10 = vweird.f32 %v1274_v56 }
 0x4bc   :  { %1715 = vrcp.f32 %v1275_v5  ;;  %v1303_v28 = vand.u32 2147483648, %v1275_v5  ;;  %v1301_v16 = vand.u32 2147483647, %v1275_v5  ;;  %vm1297_vm11 = vweird.f32 %v1275_v5 }
 0x4bd   :  { %v1289_v4 = vor.u32 1.1754944e-38, %v1288_v30  ;;  %vm1287_vm14 = vcmp.eq.f32.partialorder %v1286_v15, 8.507059e+37 }
 0x4be   :  { %v1304_v46 = vor.u32 1.1754944e-38, %v1303_v28  ;;  %vm1302_vm15 = vcmp.eq.f32.partialorder %v1301_v16, 8.507059e+37 }
 0x4bf   :  { %v1712_v21 = vpop.eup %1711 }
 0x4c0   :  { %v1276_v8 = vadd.f32 1.0, %v1712_v21 }
 0x4c1   :  { %v1714_v20 = vpop.eup %1713 }
 0x4c2   :  { %v1716_v22 = vpop.eup %1715  ;;  %v1278_v26 = vmul.f32 %v1714_v20, %v1274_v56  ;;  %1717 = vrcp.f32 %v1276_v8  ;;  %vm1283_vm8 = vweird.f32 %v1714_v20  ;;  %v1318_v9 = vand.u32 2147483648, %v1276_v8 }
 0x4c3   :  { %v1293_v35 = vmul.f32 %v1716_v22, %v1275_v5  ;;  %1719 = vtanh.f32 %v1263_v29  ;;  %vm1298_vm9 = vweird.f32 %v1716_v22  ;;  %vm1284_vm12 = vmor %vm1282_vm10, %vm1283_vm8  ;;  %vm1312_vm1 = vweird.f32 %v1276_v8 }
 0x4c4   :  { %v1279_v39 = vsub.f32 1.0, %v1278_v26  ;;  %vm1299_vm13 = vmor %vm1297_vm11, %vm1298_vm9  ;;  %v1316_v11 = vand.u32 2147483647, %v1276_v8  ;;  %v1319_v13 = vor.u32 1.1754944e-38, %v1318_v9 }
 0x4c5   :  { %v1294_v10 = vsub.f32 1.0, %v1293_v35 }
 0x4c6   :  { %v1280_v25 = vmul.f32 %v1714_v20, %v1279_v39  ;;  %vm1317_vm3 = vcmp.eq.f32.partialorder %v1316_v11, 8.507059e+37 }
 0x4c7   :  { %v1295_v3 = vmul.f32 %v1716_v22, %v1294_v10 }
 0x4c8   :  { %v1718_v27 = vpop.eup %1717  ;;  %v1281_v47 = vadd.f32 %v1714_v20, %v1280_v25 }
 0x4c9   :  { %v1308_v24 = vmul.f32 %v1718_v27, %v1276_v8  ;;  %v1296_v52 = vadd.f32 %v1716_v22, %v1295_v3  ;;  %v1720_v1 = vpop.eup %1719  ;;  %vm1313_vm0 = vweird.f32 %v1718_v27 }
 0x4ca   :  { %v1285_v54 = vsel %vm1284_vm12, %v1714_v20, %v1281_v47  ;;  %vm1314_vm2 = vmor %vm1312_vm1, %vm1313_vm0 }
 0x4cb   :  { %v1309_v59 = vsub.f32 1.0, %v1308_v24  ;;  %v1290_v17 = vsel %vm1287_vm14, %v1289_v4, %v1285_v54  ;;  %v1300_v55 = vsel %vm1299_vm13, %v1716_v22, %v1296_v52 }
 0x4cc   :  { %v1305_v36 = vsel %vm1302_vm15, %v1304_v46, %v1300_v55  ;;  %v1324_v19 = vmul.f32 %v1720_v1, %v1290_v17 }
 0x4cd   :  { %v1310_v37 = vmul.f32 %v1718_v27, %v1309_v59  ;;  %v1323_v38 = vmul.f32 %v1305_v36, %v2827_v23 }
 0x4cf   :  { %v2831_v6 = vadd.f32 %v1324_v19, %v1323_v38  ;;  %v1311_v7 = vadd.f32 %v1718_v27, %v1310_v37 }
 0x4d1   :  { %1721 = vtanh.f32 %v2831_v6  ;;  %v1315_v12 = vsel %vm1314_vm2, %v1718_v27, %v1311_v7 }
 0x4d2   :  { %v1320_v48 = vsel %vm1317_vm3, %v1319_v13, %v1315_v12 }
 0x4d7   :  { %v1722_v49 = vpop.eup %1721 }
 0x4d8   :  { %v1327_v34 = vmul.f32 %v1722_v49, %v1320_v48 }
 0x4da   :  { %v1329_v45 = vrot.slane %v1327_v34, 1  ;;  %v1330_v57 = vrot.slane %v1327_v34, 2  ;;  %v1331_v32 = vrot.slane %v1327_v34, 3  ;;  %1343 = vst [vmem:[#allocation10 + $0x6] sm:$0x1] %v1327_v34  ;;  %1372 = vmatmul.f32.vlgmr.msrb.gmra.mxu0 %v1327_v34  ;;  %1392 = vmatmul.f32.vlgmr.msrb.gmra.mxu1 %v1327_v34  ;;  %v1332_v23 = vrot.slane %v1327_v34, 4 }
 0x4db   :  { %1412 = vmatmul.f32.vlgmr.msrb.gmra.mxu2 %v1327_v34  ;;  %1432 = vmatmul.f32.vlgmr.msrb.gmra.mxu3 %v1327_v34  ;;  %v1333_v51 = vrot.slane %v1327_v34, 5  ;;  %v1334_v50 = vrot.slane %v1327_v34, 6  ;;  %v1335_v58 = vrot.slane %v1327_v34, 7 }
 0x4dc   :  { %1344 = vst [vmem:[#allocation10 + $0xe] sm:$0x1] %v1329_v45 }
 0x4dd   :  { %1345 = vst [vmem:[#allocation10 + $0x16] sm:$0x1] %v1330_v57 }
 0x4de   :  { %1346 = vst [vmem:[#allocation10 + $0x1e] sm:$0x1] %v1331_v32 }
 0x4df   :  { %1347 = vst [vmem:[#allocation10 + $0x26] sm:$0x1] %v1332_v23 }
 0x4e0   :  { %1348 = vst [vmem:[#allocation10 + $0x2e] sm:$0x1] %v1333_v51 }
 0x4e1   :  { %1349 = vst [vmem:[#allocation10 + $0x36] sm:$0x1] %v1334_v50 }
 0x4e2   :  { %1350 = vst [vmem:[#allocation10 + $0x3e] sm:$0x1] %v1335_v58 }
 0x557   :  { %v1373_v44 = vpop.f32.mrf.mxu0  ;;  %v1393_v0 = vpop.f32.mrf.mxu1 }
 0x558   :  { %v1374_v63 = vadd.f32 %v1373_v44, %v1352_v33  ;;  %v1394_v42 = vadd.f32 %v1393_v0, %v1353_v41 }
 0x55a   :  { %v1597_v40 = vmul.f32 -1.442695, %v1374_v63  ;;  %v1598_v60 = vmul.f32 -1.442695, %v1394_v42 }
 0x55c   :  { %1723 = vpow2.f32 %v1597_v40 }
 0x55d   :  { %1725 = vpow2.f32 %v1598_v60 }
 0x55e   :  { %v1413_v62 = vpop.f32.mrf.mxu2  ;;  %v1433_v18 = vpop.f32.mrf.mxu3 }
 0x55f   :  { %v1414_v53 = vadd.f32 %v1413_v62, %v1354_v61  ;;  %v1434_v29 = vadd.f32 %v1433_v18, %v1355_v31 }
 0x561   :  { %v1599_v14 = vmul.f32 -1.442695, %v1414_v53 }
 0x562   :  { %v1724_v2 = vpop.eup %1723 }
 0x563   :  { %v1726_v43 = vpop.eup %1725  ;;  %v1445_v56 = vadd.f32 1.0, %v1724_v2  ;;  %1727 = vpow2.f32 %v1599_v14 }
 0x564   :  { %v1446_v5 = vadd.f32 1.0, %v1726_v43 }
 0x565   :  { %1729 = vrcp.f32 %v1445_v56  ;;  %v1459_v30 = vand.u32 2147483648, %v1445_v56  ;;  %v1457_v15 = vand.u32 2147483647, %v1445_v56  ;;  %vm1453_vm6 = vweird.f32 %v1445_v56 }
 0x566   :  { %1731 = vrcp.f32 %v1446_v5  ;;  %v1474_v28 = vand.u32 2147483648, %v1446_v5  ;;  %v1472_v16 = vand.u32 2147483647, %v1446_v5  ;;  %vm1468_vm7 = vweird.f32 %v1446_v5 }
 0x567   :  { %v1460_v4 = vor.u32 1.1754944e-38, %v1459_v30  ;;  %vm1458_vm10 = vcmp.eq.f32.partialorder %v1457_v15, 8.507059e+37 }
 0x568   :  { %v1475_v46 = vor.u32 1.1754944e-38, %v1474_v28  ;;  %vm1473_vm11 = vcmp.eq.f32.partialorder %v1472_v16, 8.507059e+37 }
 0x569   :  { %v1728_v21 = vpop.eup %1727 }
 0x56a   :  { %v1447_v8 = vadd.f32 1.0, %v1728_v21 }
 0x56b   :  { %v1730_v20 = vpop.eup %1729 }
 0x56c   :  { %v1732_v22 = vpop.eup %1731  ;;  %v1449_v26 = vmul.f32 %v1730_v20, %v1445_v56  ;;  %1733 = vrcp.f32 %v1447_v8  ;;  %vm1454_vm4 = vweird.f32 %v1730_v20  ;;  %v1489_v11 = vand.u32 2147483648, %v1447_v8 }
 0x56d   :  { %v1464_v35 = vmul.f32 %v1732_v22, %v1446_v5  ;;  %1735 = vtanh.f32 %v1434_v29  ;;  %vm1469_vm5 = vweird.f32 %v1732_v22  ;;  %vm1455_vm8 = vmor %vm1453_vm6, %vm1454_vm4  ;;  %vm1483_vm13 = vweird.f32 %v1447_v8 }
 0x56e   :  { %v1450_v39 = vsub.f32 1.0, %v1449_v26  ;;  %vm1470_vm9 = vmor %vm1468_vm7, %vm1469_vm5  ;;  %v1487_v12 = vand.u32 2147483647, %v1447_v8  ;;  %v1490_v49 = vor.u32 1.1754944e-38, %v1489_v11 }
 0x56f   :  { %v1465_v10 = vsub.f32 1.0, %v1464_v35 }
 0x570   :  { %v1451_v25 = vmul.f32 %v1730_v20, %v1450_v39  ;;  %vm1488_vm15 = vcmp.eq.f32.partialorder %v1487_v12, 8.507059e+37 }
 0x571   :  { %v1466_v3 = vmul.f32 %v1732_v22, %v1465_v10 }
 0x572   :  { %v1734_v27 = vpop.eup %1733  ;;  %v1452_v47 = vadd.f32 %v1730_v20, %v1451_v25 }
 0x573   :  { %v1479_v24 = vmul.f32 %v1734_v27, %v1447_v8  ;;  %v1467_v52 = vadd.f32 %v1732_v22, %v1466_v3  ;;  %v1736_v1 = vpop.eup %1735  ;;  %vm1484_vm12 = vweird.f32 %v1734_v27 }
 0x574   :  { %v1456_v54 = vsel %vm1455_vm8, %v1730_v20, %v1452_v47  ;;  %vm1485_vm14 = vmor %vm1483_vm13, %vm1484_vm12 }
 0x575   :  { %v1480_v59 = vsub.f32 1.0, %v1479_v24  ;;  %v1461_v17 = vsel %vm1458_vm10, %v1460_v4, %v1456_v54  ;;  %v1471_v55 = vsel %vm1470_vm9, %v1732_v22, %v1467_v52 }
 0x576   :  { %v1476_v36 = vsel %vm1473_vm11, %v1475_v46, %v1471_v55  ;;  %v1495_v19 = vmul.f32 %v1736_v1, %v1461_v17 }
 0x577   :  { %v1481_v37 = vmul.f32 %v1734_v27, %v1480_v59  ;;  %v1494_v38 = vmul.f32 %v1476_v36, %v2831_v6 }
 0x579   :  { %v1496_v7 = vadd.f32 %v1495_v19, %v1494_v38  ;;  %v1482_v9 = vadd.f32 %v1734_v27, %v1481_v37 }
 0x57b   :  { %1737 = vtanh.f32 %v1496_v7  ;;  %1523 = vst [vmem:[#allocation13] sm:$0xff] %v1496_v7  ;;  %v1486_v13 = vsel %vm1485_vm14, %v1734_v27, %v1482_v9 }
 0x57c   :  { %v1491_v6 = vsel %vm1488_vm15, %v1490_v49, %v1486_v13 }
 0x581   :  { %v1738_v48 = vpop.eup %1737 }
 0x582   :  { %v1498_v34 = vmul.f32 %v1738_v48, %v1491_v6 }
 0x584   :  { %v1500_v45 = vrot.slane %v1498_v34, 1  ;;  %v1501_v57 = vrot.slane %v1498_v34, 2  ;;  %v1502_v32 = vrot.slane %v1498_v34, 3  ;;  %1514 = vst [vmem:[#allocation10 + $0x7] sm:$0x1] %v1498_v34  ;;  %v1503_v23 = vrot.slane %v1498_v34, 4 }
 0x585   :  { %1522 = vst [vmem:[#allocation11] sm:$0xff] %v1498_v34  ;;  %v1504_v51 = vrot.slane %v1498_v34, 5  ;;  %v1505_v50 = vrot.slane %v1498_v34, 6  ;;  %v1506_v58 = vrot.slane %v1498_v34, 7 }
 0x586   :  { %1515 = vst [vmem:[#allocation10 + $0xf] sm:$0x1] %v1500_v45  ;;  %1547 = dma.vmem_to_hbm [thread:$0]  %s1543_s3, 128, %s1545_s19, [#allocation12]  }
 0x587   :  { %1516 = vst [vmem:[#allocation10 + $0x17] sm:$0x1] %v1501_v57  ;;  %1558 = dma.vmem_to_hbm [thread:$0]  %s1554_s21, 128, %s1556_s24, [#allocation12]  }
 0x588   :  { %1517 = vst [vmem:[#allocation10 + $0x1f] sm:$0x1] %v1502_v32 }
 0x589   :  { %1518 = vst [vmem:[#allocation10 + $0x27] sm:$0x1] %v1503_v23 }
 0x58a   :  { %1519 = vst [vmem:[#allocation10 + $0x2f] sm:$0x1] %v1504_v51 }
 0x58b   :  { %1520 = vst [vmem:[#allocation10 + $0x37] sm:$0x1] %v1505_v50 }
 0x58c   :  { %1521 = vst [vmem:[#allocation10 + $0x3f] sm:$0x1] %v1506_v58 }
 0x58d   :  { %1536 = dma.vmem_to_hbm [thread:$0]  %s1529_s25, 1024, %s1531_s28, [#allocation4], %s1990_s6, %s1990_s6, %s1991_s29  }
 0x58e   :  { %1977 = dma.done.wait [#allocation4], 1024  }
 0x58f   :  { %1978 = vsyncadd [#allocation4], 4294966272 }
 0x590   :  { %1979 = dma.done.wait [#allocation12], 256  }
 0x591   :  { %1980 = vsyncadd [#allocation12], 4294967040 }
 0x592   :  { %1571 = vsyncpa [#allocation3], 1 }
 0x593   :  { %1572 = vsyncpa [#allocation6], 1 }
 0x594   :  { %1573 = vsyncpa [#allocation9], 1 }
 0x595   :  { %1574 = vsyncpa [#allocation4], 1 }
 0x596   :  { %1575 = vsyncpa [#allocation12], 1 }

</bundles_post_ra>
